<compile_context>
chip_gen: v6e
topology: v6e:2x2x1
jax: 0.10.0
libtpu: 0.0.40
codegen_flags: <defaults>
</compile_context>

<pallas_src>
import functools

import jax
import jax.numpy as jnp
from jax.experimental import pallas as pl
from jax.experimental.pallas import tpu as pltpu

LN_EPS = 1e-5  # PyTorch nn.LayerNorm default eps


def _round_up(n, m):
    return ((n + m - 1) // m) * m


# --------------------------------------------------------------------------- #
# Kernel
# --------------------------------------------------------------------------- #
def _mlp_fused_kernel(*refs, ln_true_dims, n_layers):
    """Fused forward for the whole MLP on one (TILE_B, *) batch tile.

    refs = (x_ref, w0, b0, w1, b1, ..., w_{L-1}, b_{L-1}, o_ref, acc_ref)

    Grid = (batch_tiles, k0_tiles).  The innermost axis K-tiles ONLY the first
    layer's contraction; all remaining layers run in the epilogue on the last
    K step.  ln_true_dims[i] = un-padded hidden width of layer i (LayerNorm
    stats are computed over the true width; padded lanes are exactly zero).
    """
    x_ref = refs[0]
    o_ref = refs[-2]
    acc_ref = refs[-1]
    wb = refs[1:-2]

    k = pl.program_id(1)
    nk = pl.num_programs(1)

    @pl.when(k == 0)
    def _init():
        acc_ref[...] = jnp.zeros_like(acc_ref)

    # Layer 0 partial matmul for this K chunk: bf16 operands, f32 accumulation.
    acc_ref[...] += jnp.dot(
        x_ref[...].astype(jnp.bfloat16), wb[0][...],
        preferred_element_type=jnp.float32)

    @pl.when(k == nk - 1)
    def _epilogue():
        # Padded lanes of every layer output are exactly 0 because the padded
        # W columns / bias entries are zero, so the un-masked sum is already the
        # correct mean numerator.  Only the variance/ReLU need lane masks.
        mask_cache = {}

        def ln_relu(y, d_true):
            d_pad = y.shape[-1]
            inv_n = 1.0 / float(d_true)
            mean = jnp.sum(y, axis=-1, keepdims=True) * inv_n
            centered = y - mean
            if d_pad == d_true:
                var = jnp.sum(centered * centered, axis=-1, keepdims=True) * inv_n
                return jnp.maximum(centered * jax.lax.rsqrt(var + LN_EPS), 0.0)
            key = (d_pad, d_true)
            if key not in mask_cache:  # hoist iota+compare; reuse across layers
                mask_cache[key] = (
                    jax.lax.broadcasted_iota(jnp.int32, y.shape, 1) < d_true)
            mask = mask_cache[key]
            cm = jnp.where(mask, centered, 0.0)
            var = jnp.sum(cm * cm, axis=-1, keepdims=True) * inv_n
            # Fold ReLU + padded-lane zeroing into a single select.
            return jnp.where(
                mask, jnp.maximum(centered * jax.lax.rsqrt(var + LN_EPS), 0.0), 0.0)

        h = acc_ref[...] + wb[1][...]           # layer-0 bias add (f32)
        if n_layers > 1:
            h = ln_relu(h, ln_true_dims[0])     # Dropout is identity in eval mode.
            for li in range(1, n_layers):
                w_ref = wb[2 * li]
                b_ref = wb[2 * li + 1]
                y = jnp.dot(h.astype(jnp.bfloat16), w_ref[...],
                            preferred_element_type=jnp.float32) + b_ref[...]
                if li < n_layers - 1:
                    h = ln_relu(y, ln_true_dims[li])
                else:
                    h = y
        o_ref[...] = h.astype(o_ref.dtype)


# --------------------------------------------------------------------------- #
# Wrapper helpers
# --------------------------------------------------------------------------- #
def prepare_mlp_params(params, *, k0_tile=512, k0_tile_threshold=2048):
    """Pad / cast the weights ONCE (bf16 weights, f32 biases, 128-lane padding).

    params = list of (W, b) with W shaped (in, out).  Returns (flat_wb, meta).
    """
    dims = [params[0][0].shape[0]] + [w.shape[1] for (w, _) in params]
    dims_p = [_round_up(d, 128) for d in dims]

    # K-tile the first layer's contraction when the (padded) input dim is big.
    if dims_p[0] > k0_tile_threshold:
        tk0 = k0_tile
        dims_p[0] = _round_up(dims_p[0], tk0)
    else:
        tk0 = dims_p[0]

    flat_wb = []
    for li, (w, b) in enumerate(params):
        in_d, out_d = w.shape
        wp = jnp.pad(w.astype(jnp.bfloat16),
                     ((0, dims_p[li] - in_d), (0, dims_p[li + 1] - out_d)))
        bp = jnp.pad(b.astype(jnp.float32),
                     (0, dims_p[li + 1] - out_d)).reshape(1, dims_p[li + 1])
        flat_wb.extend((wp, bp))

    meta = dict(
        dims=tuple(dims),
        dims_p=tuple(dims_p),
        tk0=int(tk0),
        ln_true_dims=tuple(w.shape[1] for (w, _) in params[:-1]),
        n_layers=len(params),
        output_dim=int(dims[-1]),
    )
    return flat_wb, meta


def _device_vmem_bytes():
    try:
        info = pltpu.get_tpu_info()
        cap = getattr(info, "vmem_capacity_bytes", None)
        if cap:
            return int(cap)
    except Exception:
        pass
    try:
        kind = jax.devices()[0].device_kind.lower()
    except Exception:
        kind = ""
    if "7" in kind:                      # v7x: 64 MiB per TensorCore
        return 64 * 1024 * 1024
    if kind:                             # v5e / v6e: 128 MiB
        return 128 * 1024 * 1024
    return 64 * 1024 * 1024              # conservative fallback


def _preferred_tile_b():
    try:
        kind = jax.devices()[0].device_kind.lower()
    except Exception:
        kind = ""
    if "v5 lite" in kind or "v5e" in kind or "v5lite" in kind:
        return 128   # v5e MXU is 128x128; keep the working set small
    if "v6" in kind:
        return 512   # v6e: 256x256 MXU + 128 MiB VMEM; try 512, shrink if needed
    if "7" in kind:
        return 256   # v7x: 64 MiB/TC, weights duplicated per TC
    return 256


def _vmem_estimate(tile_b, dims_p, tk0, flat_wb, x_itemsize, out_itemsize,
                   single_buffer_weights):
    nk = dims_p[0] // tk0
    wbuf = 1 if single_buffer_weights else 2
    total = 0
    for idx in range(0, len(flat_wb), 2):
        w = flat_wb[idx]
        b = flat_wb[idx + 1]
        if idx == 0 and nk > 1:
            total += 2 * tk0 * dims_p[1] * w.dtype.itemsize   # streamed W0 chunks
        else:
            total += wbuf * w.size * w.dtype.itemsize          # VMEM-resident
        total += wbuf * b.size * b.dtype.itemsize
    total += 2 * tile_b * tk0 * x_itemsize                     # double-buffered x tile
    total += 2 * tile_b * dims_p[-1] * out_itemsize            # double-buffered out tile
    total += tile_b * dims_p[1] * 4                            # f32 accumulator scratch
    total += 4 * tile_b * max(dims_p[1:]) * 4                  # epilogue temporaries
    return total


# --------------------------------------------------------------------------- #
# Forward
# --------------------------------------------------------------------------- #
def mlp_forward(x, flat_wb, meta, *, tile_b=None):
    """x: (batch, input_dim). flat_wb/meta from prepare_mlp_params."""
    batch, input_dim = x.shape
    assert input_dim == meta["dims"][0]

    dims_p = meta["dims_p"]
    tk0 = meta["tk0"]
    n_layers = meta["n_layers"]
    out_dtype = x.dtype
    x_itemsize = jnp.dtype(x.dtype).itemsize
    out_itemsize = jnp.dtype(out_dtype).itemsize
    sub = 8 if x_itemsize >= 4 else 16   # sublane-aligned batch tiles

    vmem_cap = _device_vmem_bytes()
    vmem_target = vmem_cap - (8 << 20)

    # --- tile_b selection: per-generation preference, VMEM fit, batch-pad waste.
    if tile_b is None:
        tile_b = _preferred_tile_b()
    batch_s = _round_up(max(batch, 1), sub)
    tile_b = _round_up(min(tile_b, batch_s), sub)
    while tile_b > 64 and _vmem_estimate(tile_b, dims_p, tk0, flat_wb,
                                         x_itemsize, out_itemsize,
                                         True) > vmem_target:
        tile_b = _round_up(max(tile_b // 2, sub), sub)
    best, best_waste = tile_b, _round_up(batch_s, tile_b) - batch_s
    c = tile_b
    while c > 64 and best_waste > 0:
        c = _round_up(max(c // 2, sub), sub)
        waste = _round_up(batch_s, c) - batch_s
        if waste < best_waste:
            best, best_waste = c, waste
    tile_b = best

    batch_p = _round_up(batch, tile_b)
    nk = dims_p[0] // tk0
    grid = (batch_p // tile_b, nk)

    # --- pad x (original dtype: no f32 up-cast, half the DMA for bf16 inputs).
    x_p = x
    if batch_p != batch or dims_p[0] != input_dim:
        x_p = jnp.pad(x, ((0, batch_p - batch), (0, dims_p[0] - input_dim)))

    # --- cost estimate -----------------------------------------------------
    flops = 2 * batch_p * sum(dims_p[i] * dims_p[i + 1]
                              for i in range(len(dims_p) - 1))
    transcendentals = batch_p * max(n_layers - 1, 0)
    bytes_accessed = (sum(a.size * a.dtype.itemsize for a in flat_wb)
                      + batch_p * dims_p[0] * x_itemsize
                      + batch_p * dims_p[-1] * out_itemsize)
    cost = pl.CostEstimate(flops=int(flops), transcendentals=int(transcendentals),
                           bytes_accessed=int(bytes_accessed))

    kernel = functools.partial(_mlp_fused_kernel,
                               ln_true_dims=meta["ln_true_dims"],
                               n_layers=n_layers)

    def run(single_buffer_weights):
        def const_spec(shape):
            if single_buffer_weights:
                return pl.BlockSpec(shape, lambda i, k: (0, 0),
                                    pipeline_mode=pl.Buffered(1))
            return pl.BlockSpec(shape, lambda i, k: (0, 0))

        in_specs = [pl.BlockSpec((tile_b, tk0), lambda i, k: (i, k))]
        for idx in range(0, len(flat_wb), 2):
            wp, bp = flat_wb[idx], flat_wb[idx + 1]
            if idx == 0 and nk > 1:
                # Streamed W0 K-chunks: keep default double-buffering.
                in_specs.append(pl.BlockSpec((tk0, dims_p[1]), lambda i, k: (k, 0)))
            else:
                in_specs.append(const_spec(wp.shape))
            in_specs.append(const_spec(bp.shape))
        out_spec = pl.BlockSpec((tile_b, dims_p[-1]), lambda i, k: (i, 0))

        vmem_est = _vmem_estimate(tile_b, dims_p, tk0, flat_wb, x_itemsize,
                                  out_itemsize, single_buffer_weights)
        # Always set an explicit limit (v5e default scoped VMEM is only 16 MiB),
        # clamped to the physical capacity of this generation (64 MiB on v7x).
        vmem_limit = int(min(max(int(1.5 * vmem_est) + (2 << 20), 32 << 20),
                             vmem_cap - (4 << 20)))

        return pl.pallas_call(
            kernel,
            out_shape=jax.ShapeDtypeStruct((batch_p, dims_p[-1]), out_dtype),
            grid=grid,
            in_specs=in_specs,
            out_specs=out_spec,
            scratch_shapes=[pltpu.VMEM((tile_b, dims_p[1]), jnp.float32)],
            compiler_params=pltpu.CompilerParams(
                dimension_semantics=("parallel", "arbitrary"),
                vmem_limit_bytes=vmem_limit),
            cost_estimate=cost,
        )(x_p, *flat_wb)

    try:
        out_p = run(True)
    except Exception:
        # Fallback if this JAX/libtpu rejects pipeline_mode=pl.Buffered(1).
        out_p = run(False)

    return out_p[:batch, :meta["output_dim"]]


# --------------------------------------------------------------------------- #
# References / init / demo
# --------------------------------------------------------------------------- #
def mlp_reference_f32(x, params):
    """Pure-JAX f32 reference matching the PyTorch module in eval mode."""
    h = x.astype(jnp.float32)
    for (w, b) in params[:-1]:
        y = h @ w + b
        mean = jnp.mean(y, axis=-1, keepdims=True)
        var = jnp.mean(jnp.square(y - mean), axis=-1, keepdims=True)
        h = jnp.maximum((y - mean) / jnp.sqrt(var + LN_EPS), 0.0)
    w, b = params[-1]
    return h @ w + b


def mlp_reference_bf16(x, params):
    """Reference with the kernel's numerics: bf16 matmul operands, f32 accum."""
    h = x.astype(jnp.float32)
    L = len(params)
    for li, (w, b) in enumerate(params):
        y = jnp.dot(h.astype(jnp.bfloat16), w.astype(jnp.bfloat16),
                    preferred_element_type=jnp.float32) + b.astype(jnp.float32)
        if li < L - 1:
            mean = jnp.mean(y, axis=-1, keepdims=True)
            var = jnp.mean(jnp.square(y - mean), axis=-1, keepdims=True)
            h = jnp.maximum((y - mean) * jax.lax.rsqrt(var + LN_EPS), 0.0)
        else:
            h = y
    return h


def init_mlp_params(key, input_dim, hidden_dim, output_dim, n_layers):
    """Deterministic init mirroring the PyTorch module's layer structure
    (n_layers hidden Linear layers + 1 output Linear); W stored as (in, out)."""
    dims = [input_dim] + [hidden_dim] * n_layers + [output_dim]
    params = []
    for i in range(len(dims) - 1):
        key, wk, bk = jax.random.split(key, 3)
        fan_in, fan_out = dims[i], dims[i + 1]
        bound = 1.0 / jnp.sqrt(fan_in)  # PyTorch nn.Linear default init range
        w = jax.random.uniform(wk, (fan_in, fan_out), jnp.float32, -bound, bound)
        b = jax.random.uniform(bk, (fan_out,), jnp.float32, -bound, bound)
        params.append((w, b))
    return params


if __name__ == "__main__":
    # Small, forward-consistent shapes.
    batch = 8
    input_dim = 32
    hidden_dim = 32
    output_dim = 16
    n_layers = 3
    # dropout=0.1 in the module; identity in eval mode.
    # TODO(synk): training-mode Dropout and norm='batch' (BatchNorm1d running
    # stats) are not implemented; forward matches eval() with norm='layer'.

    key = jax.random.PRNGKey(0)
    key, xk = jax.random.split(key)
    x = jax.random.normal(xk, (batch, input_dim), jnp.float32)

    params = init_mlp_params(key, input_dim, hidden_dim, output_dim, n_layers)

    flat_wb, meta = prepare_mlp_params(params)   # pad/cast weights ONCE
    out = mlp_forward(x, flat_wb, meta)
    jax.block_until_ready(out)
    assert out.shape == (batch, output_dim)

    # Tight check vs a reference using the same bf16-matmul numerics.
    ref_bf16 = mlp_reference_bf16(x, params)
    assert jnp.allclose(out, ref_bf16, rtol=2e-3, atol=2e-3), (
        float(jnp.max(jnp.abs(out - ref_bf16))))

    # Loose check vs the full-f32 reference (bf16 matmul inputs, f32 accum).
    ref_f32 = mlp_reference_f32(x, params)
    assert jnp.allclose(out, ref_f32, rtol=5e-2, atol=5e-2), (
        float(jnp.max(jnp.abs(out - ref_f32))))

    print("KERNEL_OK")
</pallas_src>

<mosaic_0001>
module attributes {stable_mosaic.version = 11 : i64} {
  func.func @_mlp_fused_kernel(%arg0: i32, %arg1: i32, %arg2: memref<8x128xf32, #tpu.memory_space<vmem>>, %arg3: memref<128x128xbf16, #tpu.memory_space<vmem>>, %arg4: memref<1x128xf32, #tpu.memory_space<vmem>>, %arg5: memref<128x128xbf16, #tpu.memory_space<vmem>>, %arg6: memref<1x128xf32, #tpu.memory_space<vmem>>, %arg7: memref<128x128xbf16, #tpu.memory_space<vmem>>, %arg8: memref<1x128xf32, #tpu.memory_space<vmem>>, %arg9: memref<128x128xbf16, #tpu.memory_space<vmem>>, %arg10: memref<1x128xf32, #tpu.memory_space<vmem>>, %arg11: memref<8x128xf32, #tpu.memory_space<vmem>>, %arg12: memref<8x128xf32, #tpu.memory_space<vmem>>) attributes {dimension_semantics = [#tpu.dimension_semantics<parallel>, #tpu.dimension_semantics<arbitrary>], iteration_bounds = array<i64: 1, 1>, scalar_prefetch = 0 : i64, scratch_operands = 1 : i64, tpu.core_type = #tpu.core_type<tc>, window_params = [{transform_indices = @transform_0, window_bounds = array<i64: 8, 128>}, {pipeline_mode = #tpu.pipeline_mode<synchronous>, transform_indices = @transform_1, window_bounds = array<i64: 128, 128>}, {pipeline_mode = #tpu.pipeline_mode<synchronous>, transform_indices = @transform_2, window_bounds = array<i64: 1, 128>}, {pipeline_mode = #tpu.pipeline_mode<synchronous>, transform_indices = @transform_3, window_bounds = array<i64: 128, 128>}, {pipeline_mode = #tpu.pipeline_mode<synchronous>, transform_indices = @transform_4, window_bounds = array<i64: 1, 128>}, {pipeline_mode = #tpu.pipeline_mode<synchronous>, transform_indices = @transform_5, window_bounds = array<i64: 128, 128>}, {pipeline_mode = #tpu.pipeline_mode<synchronous>, transform_indices = @transform_6, window_bounds = array<i64: 1, 128>}, {pipeline_mode = #tpu.pipeline_mode<synchronous>, transform_indices = @transform_7, window_bounds = array<i64: 128, 128>}, {pipeline_mode = #tpu.pipeline_mode<synchronous>, transform_indices = @transform_8, window_bounds = array<i64: 1, 128>}, {transform_indices = @transform_9, window_bounds = array<i64: 8, 128>}]} {
    %c0_i32 = arith.constant 0 : i32
    %0 = arith.cmpi eq, %arg1, %c0_i32 : i32
    %1 = arith.extui %0 : i1 to i32
    %c0_i32_0 = arith.constant 0 : i32
    %2 = arith.cmpi ne, %1, %c0_i32_0 : i32
    scf.if %2 {
      %cst_10 = arith.constant 0.000000e+00 : f32
      %13 = vector.broadcast %cst_10 : f32 to vector<8x128xf32>
      %c0_11 = arith.constant 0 : index
      %c0_12 = arith.constant 0 : index
      %14 = vector.load %arg12[%c0_11, %c0_12] : memref<8x128xf32, #tpu.memory_space<vmem>>, vector<8x128xf32>
      tpu.vector_store %arg12[%c0_11, %c0_12], %13 {strides = array<i32>} : memref<8x128xf32, #tpu.memory_space<vmem>>, vector<8x128xf32>,
    } else {
    }
    %c0 = arith.constant 0 : index
    %c0_1 = arith.constant 0 : index
    %3 = vector.load %arg12[%c0, %c0_1] : memref<8x128xf32, #tpu.memory_space<vmem>>, vector<8x128xf32>
    %c0_2 = arith.constant 0 : index
    %c0_3 = arith.constant 0 : index
    %4 = vector.load %arg2[%c0_2, %c0_3] : memref<8x128xf32, #tpu.memory_space<vmem>>, vector<8x128xf32>
    %5 = arith.truncf %4 : vector<8x128xf32> to vector<8x128xbf16>
    %c0_4 = arith.constant 0 : index
    %c0_5 = arith.constant 0 : index
    %6 = vector.load %arg3[%c0_4, %c0_5] : memref<128x128xbf16, #tpu.memory_space<vmem>>, vector<128x128xbf16>
    %cst = arith.constant dense<0.000000e+00> : vector<8x128xf32>
    %7 = tpu.matmul %5, %6, %cst {dimension_numbers = #tpu.dot_dimension_numbers<[1], [0], [0], [1], [0, 0, 1, 1], [], []>} : vector<8x128xbf16>, vector<128x128xbf16>, vector<8x128xf32> -> vector<8x128xf32>
    %8 = arith.addf %3, %7 : vector<8x128xf32>
    %c0_6 = arith.constant 0 : index
    %c0_7 = arith.constant 0 : index
    %9 = vector.load %arg12[%c0_6, %c0_7] : memref<8x128xf32, #tpu.memory_space<vmem>>, vector<8x128xf32>
    tpu.vector_store %arg12[%c0_6, %c0_7], %8 {strides = array<i32>} : memref<8x128xf32, #tpu.memory_space<vmem>>, vector<8x128xf32>,
    %c0_i32_8 = arith.constant 0 : i32
    %10 = arith.cmpi eq, %arg1, %c0_i32_8 : i32
    %11 = arith.extui %10 : i1 to i32
    %c0_i32_9 = arith.constant 0 : i32
    %12 = arith.cmpi ne, %11, %c0_i32_9 : i32
    scf.if %12 {
      %c0_10 = arith.constant 0 : index
      %c0_11 = arith.constant 0 : index
      %13 = vector.load %arg12[%c0_10, %c0_11] : memref<8x128xf32, #tpu.memory_space<vmem>>, vector<8x128xf32>
      %c0_12 = arith.constant 0 : index
      %c0_13 = arith.constant 0 : index
      %14 = vector.load %arg4[%c0_12, %c0_13] : memref<1x128xf32, #tpu.memory_space<vmem>>, vector<1x128xf32>
      %15 = vector.broadcast %14 : vector<1x128xf32> to vector<8x128xf32>
      %16 = arith.addf %13, %15 : vector<8x128xf32>
      %cst_14 = arith.constant dense<0.000000e+00> : vector<8xf32>
      %17 = vector.multi_reduction <add>, %16, %cst_14 [1] : vector<8x128xf32> to vector<8xf32>
      %18 = vector.shape_cast %17 : vector<8xf32> to vector<8x1xf32>
      %cst_15 = arith.constant 3.125000e-02 : f32
      %19 = vector.broadcast %cst_15 : f32 to vector<8x1xf32>
      %20 = arith.mulf %18, %19 : vector<8x1xf32>
      %21 = vector.broadcast %20 : vector<8x1xf32> to vector<8x128xf32>
      %22 = arith.subf %16, %21 : vector<8x128xf32>
      %23 = tpu.iota {dimensions = array<i32: 1>} : vector<8x128xi32>
      %c32_i32 = arith.constant 32 : i32
      %24 = vector.broadcast %c32_i32 : i32 to vector<8x128xi32>
      %25 = arith.cmpi slt, %23, %24 : vector<8x128xi32>
      %cst_16 = arith.constant 0.000000e+00 : f32
      %26 = vector.broadcast %cst_16 : f32 to vector<8x128xf32>
      %27 = arith.select %25, %22, %26 : vector<8x128xi1>, vector<8x128xf32>
      %28 = arith.mulf %27, %27 : vector<8x128xf32>
      %cst_17 = arith.constant dense<0.000000e+00> : vector<8xf32>
      %29 = vector.multi_reduction <add>, %28, %cst_17 [1] : vector<8x128xf32> to vector<8xf32>
      %30 = vector.shape_cast %29 : vector<8xf32> to vector<8x1xf32>
      %cst_18 = arith.constant 3.125000e-02 : f32
      %31 = vector.broadcast %cst_18 : f32 to vector<8x1xf32>
      %32 = arith.mulf %30, %31 : vector<8x1xf32>
      %cst_19 = arith.constant 9.99999974E-6 : f32
      %33 = vector.broadcast %cst_19 : f32 to vector<8x1xf32>
      %34 = arith.addf %32, %33 : vector<8x1xf32>
      %35 = math.rsqrt %34 : vector<8x1xf32>
      %36 = vector.broadcast %35 : vector<8x1xf32> to vector<8x128xf32>
      %37 = arith.mulf %22, %36 : vector<8x128xf32>
      %cst_20 = arith.constant 0.000000e+00 : f32
      %38 = vector.broadcast %cst_20 : f32 to vector<8x128xf32>
      %39 = arith.maximumf %37, %38 : vector<8x128xf32>
      %cst_21 = arith.constant 0.000000e+00 : f32
      %40 = vector.broadcast %cst_21 : f32 to vector<8x128xf32>
      %41 = arith.select %25, %39, %40 : vector<8x128xi1>, vector<8x128xf32>
      %42 = arith.truncf %41 : vector<8x128xf32> to vector<8x128xbf16>
      %c0_22 = arith.constant 0 : index
      %c0_23 = arith.constant 0 : index
      %43 = vector.load %arg5[%c0_22, %c0_23] : memref<128x128xbf16, #tpu.memory_space<vmem>>, vector<128x128xbf16>
      %cst_24 = arith.constant dense<0.000000e+00> : vector<8x128xf32>
      %44 = tpu.matmul %42, %43, %cst_24 {dimension_numbers = #tpu.dot_dimension_numbers<[1], [0], [0], [1], [0, 0, 1, 1], [], []>} : vector<8x128xbf16>, vector<128x128xbf16>, vector<8x128xf32> -> vector<8x128xf32>
      %c0_25 = arith.constant 0 : index
      %c0_26 = arith.constant 0 : index
      %45 = vector.load %arg6[%c0_25, %c0_26] : memref<1x128xf32, #tpu.memory_space<vmem>>, vector<1x128xf32>
      %46 = vector.broadcast %45 : vector<1x128xf32> to vector<8x128xf32>
      %47 = arith.addf %44, %46 : vector<8x128xf32>
      %cst_27 = arith.constant dense<0.000000e+00> : vector<8xf32>
      %48 = vector.multi_reduction <add>, %47, %cst_27 [1] : vector<8x128xf32> to vector<8xf32>
      %49 = vector.shape_cast %48 : vector<8xf32> to vector<8x1xf32>
      %cst_28 = arith.constant 3.125000e-02 : f32
      %50 = vector.broadcast %cst_28 : f32 to vector<8x1xf32>
      %51 = arith.mulf %49, %50 : vector<8x1xf32>
      %52 = vector.broadcast %51 : vector<8x1xf32> to vector<8x128xf32>
      %53 = arith.subf %47, %52 : vector<8x128xf32>
      %cst_29 = arith.constant 0.000000e+00 : f32
      %54 = vector.broadcast %cst_29 : f32 to vector<8x128xf32>
      %55 = arith.select %25, %53, %54 : vector<8x128xi1>, vector<8x128xf32>
      %56 = arith.mulf %55, %55 : vector<8x128xf32>
      %cst_30 = arith.constant dense<0.000000e+00> : vector<8xf32>
      %57 = vector.multi_reduction <add>, %56, %cst_30 [1] : vector<8x128xf32> to vector<8xf32>
      %58 = vector.shape_cast %57 : vector<8xf32> to vector<8x1xf32>
      %cst_31 = arith.constant 3.125000e-02 : f32
      %59 = vector.broadcast %cst_31 : f32 to vector<8x1xf32>
      %60 = arith.mulf %58, %59 : vector<8x1xf32>
      %cst_32 = arith.constant 9.99999974E-6 : f32
      %61 = vector.broadcast %cst_32 : f32 to vector<8x1xf32>
      %62 = arith.addf %60, %61 : vector<8x1xf32>
      %63 = math.rsqrt %62 : vector<8x1xf32>
      %64 = vector.broadcast %63 : vector<8x1xf32> to vector<8x128xf32>
      %65 = arith.mulf %53, %64 : vector<8x128xf32>
      %cst_33 = arith.constant 0.000000e+00 : f32
      %66 = vector.broadcast %cst_33 : f32 to vector<8x128xf32>
      %67 = arith.maximumf %65, %66 : vector<8x128xf32>
      %cst_34 = arith.constant 0.000000e+00 : f32
      %68 = vector.broadcast %cst_34 : f32 to vector<8x128xf32>
      %69 = arith.select %25, %67, %68 : vector<8x128xi1>, vector<8x128xf32>
      %70 = arith.truncf %69 : vector<8x128xf32> to vector<8x128xbf16>
      %c0_35 = arith.constant 0 : index
      %c0_36 = arith.constant 0 : index
      %71 = vector.load %arg7[%c0_35, %c0_36] : memref<128x128xbf16, #tpu.memory_space<vmem>>, vector<128x128xbf16>
      %cst_37 = arith.constant dense<0.000000e+00> : vector<8x128xf32>
      %72 = tpu.matmul %70, %71, %cst_37 {dimension_numbers = #tpu.dot_dimension_numbers<[1], [0], [0], [1], [0, 0, 1, 1], [], []>} : vector<8x128xbf16>, vector<128x128xbf16>, vector<8x128xf32> -> vector<8x128xf32>
      %c0_38 = arith.constant 0 : index
      %c0_39 = arith.constant 0 : index
      %73 = vector.load %arg8[%c0_38, %c0_39] : memref<1x128xf32, #tpu.memory_space<vmem>>, vector<1x128xf32>
      %74 = vector.broadcast %73 : vector<1x128xf32> to vector<8x128xf32>
      %75 = arith.addf %72, %74 : vector<8x128xf32>
      %cst_40 = arith.constant dense<0.000000e+00> : vector<8xf32>
      %76 = vector.multi_reduction <add>, %75, %cst_40 [1] : vector<8x128xf32> to vector<8xf32>
      %77 = vector.shape_cast %76 : vector<8xf32> to vector<8x1xf32>
      %cst_41 = arith.constant 3.125000e-02 : f32
      %78 = vector.broadcast %cst_41 : f32 to vector<8x1xf32>
      %79 = arith.mulf %77, %78 : vector<8x1xf32>
      %80 = vector.broadcast %79 : vector<8x1xf32> to vector<8x128xf32>
      %81 = arith.subf %75, %80 : vector<8x128xf32>
      %cst_42 = arith.constant 0.000000e+00 : f32
      %82 = vector.broadcast %cst_42 : f32 to vector<8x128xf32>
      %83 = arith.select %25, %81, %82 : vector<8x128xi1>, vector<8x128xf32>
      %84 = arith.mulf %83, %83 : vector<8x128xf32>
      %cst_43 = arith.constant dense<0.000000e+00> : vector<8xf32>
      %85 = vector.multi_reduction <add>, %84, %cst_43 [1] : vector<8x128xf32> to vector<8xf32>
      %86 = vector.shape_cast %85 : vector<8xf32> to vector<8x1xf32>
      %cst_44 = arith.constant 3.125000e-02 : f32
      %87 = vector.broadcast %cst_44 : f32 to vector<8x1xf32>
      %88 = arith.mulf %86, %87 : vector<8x1xf32>
      %cst_45 = arith.constant 9.99999974E-6 : f32
      %89 = vector.broadcast %cst_45 : f32 to vector<8x1xf32>
      %90 = arith.addf %88, %89 : vector<8x1xf32>
      %91 = math.rsqrt %90 : vector<8x1xf32>
      %92 = vector.broadcast %91 : vector<8x1xf32> to vector<8x128xf32>
      %93 = arith.mulf %81, %92 : vector<8x128xf32>
      %cst_46 = arith.constant 0.000000e+00 : f32
      %94 = vector.broadcast %cst_46 : f32 to vector<8x128xf32>
      %95 = arith.maximumf %93, %94 : vector<8x128xf32>
      %cst_47 = arith.constant 0.000000e+00 : f32
      %96 = vector.broadcast %cst_47 : f32 to vector<8x128xf32>
      %97 = arith.select %25, %95, %96 : vector<8x128xi1>, vector<8x128xf32>
      %98 = arith.truncf %97 : vector<8x128xf32> to vector<8x128xbf16>
      %c0_48 = arith.constant 0 : index
      %c0_49 = arith.constant 0 : index
      %99 = vector.load %arg9[%c0_48, %c0_49] : memref<128x128xbf16, #tpu.memory_space<vmem>>, vector<128x128xbf16>
      %cst_50 = arith.constant dense<0.000000e+00> : vector<8x128xf32>
      %100 = tpu.matmul %98, %99, %cst_50 {dimension_numbers = #tpu.dot_dimension_numbers<[1], [0], [0], [1], [0, 0, 1, 1], [], []>} : vector<8x128xbf16>, vector<128x128xbf16>, vector<8x128xf32> -> vector<8x128xf32>
      %c0_51 = arith.constant 0 : index
      %c0_52 = arith.constant 0 : index
      %101 = vector.load %arg10[%c0_51, %c0_52] : memref<1x128xf32, #tpu.memory_space<vmem>>, vector<1x128xf32>
      %102 = vector.broadcast %101 : vector<1x128xf32> to vector<8x128xf32>
      %103 = arith.addf %100, %102 : vector<8x128xf32>
      %c0_53 = arith.constant 0 : index
      %c0_54 = arith.constant 0 : index
      %104 = vector.load %arg11[%c0_53, %c0_54] : memref<8x128xf32, #tpu.memory_space<vmem>>, vector<8x128xf32>
      tpu.vector_store %arg11[%c0_53, %c0_54], %103 {strides = array<i32>} : memref<8x128xf32, #tpu.memory_space<vmem>>, vector<8x128xf32>,
    } else {
    }
    return
  }
  func.func @transform_0(%arg0: i32, %arg1: i32) -> (i32, i32) {
    %c0_i32 = arith.constant 0 : i32
    return %arg0, %arg1 : i32, i32
  }
  func.func @transform_1(%arg0: i32, %arg1: i32) -> (i32, i32) {
    %c0_i32 = arith.constant 0 : i32
    %c0_i32_0 = arith.constant 0 : i32
    %c0_i32_1 = arith.constant 0 : i32
    return %c0_i32, %c0_i32_0 : i32, i32
  }
  func.func @transform_2(%arg0: i32, %arg1: i32) -> (i32, i32) {
    %c0_i32 = arith.constant 0 : i32
    %c0_i32_0 = arith.constant 0 : i32
    %c0_i32_1 = arith.constant 0 : i32
    return %c0_i32, %c0_i32_0 : i32, i32
  }
  func.func @transform_3(%arg0: i32, %arg1: i32) -> (i32, i32) {
    %c0_i32 = arith.constant 0 : i32
    %c0_i32_0 = arith.constant 0 : i32
    %c0_i32_1 = arith.constant 0 : i32
    return %c0_i32, %c0_i32_0 : i32, i32
  }
  func.func @transform_4(%arg0: i32, %arg1: i32) -> (i32, i32) {
    %c0_i32 = arith.constant 0 : i32
    %c0_i32_0 = arith.constant 0 : i32
    %c0_i32_1 = arith.constant 0 : i32
    return %c0_i32, %c0_i32_0 : i32, i32
  }
  func.func @transform_5(%arg0: i32, %arg1: i32) -> (i32, i32) {
    %c0_i32 = arith.constant 0 : i32
    %c0_i32_0 = arith.constant 0 : i32
    %c0_i32_1 = arith.constant 0 : i32
    return %c0_i32, %c0_i32_0 : i32, i32
  }
  func.func @transform_6(%arg0: i32, %arg1: i32) -> (i32, i32) {
    %c0_i32 = arith.constant 0 : i32
    %c0_i32_0 = arith.constant 0 : i32
    %c0_i32_1 = arith.constant 0 : i32
    return %c0_i32, %c0_i32_0 : i32, i32
  }
  func.func @transform_7(%arg0: i32, %arg1: i32) -> (i32, i32) {
    %c0_i32 = arith.constant 0 : i32
    %c0_i32_0 = arith.constant 0 : i32
    %c0_i32_1 = arith.constant 0 : i32
    return %c0_i32, %c0_i32_0 : i32, i32
  }
  func.func @transform_8(%arg0: i32, %arg1: i32) -> (i32, i32) {
    %c0_i32 = arith.constant 0 : i32
    %c0_i32_0 = arith.constant 0 : i32
    %c0_i32_1 = arith.constant 0 : i32
    return %c0_i32, %c0_i32_0 : i32, i32
  }
  func.func @transform_9(%arg0: i32, %arg1: i32) -> (i32, i32) {
    %c0_i32 = arith.constant 0 : i32
    %c0_i32_0 = arith.constant 0 : i32
    return %arg0, %c0_i32 : i32, i32
  }
}

module attributes {stable_mosaic.version = 11 : i64} {
  func.func @_mlp_fused_kernel(%arg0: i32, %arg1: i32, %arg2: memref<8x128xf32, #tpu.memory_space<vmem>>, %arg3: memref<128x128xbf16, #tpu.memory_space<vmem>>, %arg4: memref<1x128xf32, #tpu.memory_space<vmem>>, %arg5: memref<128x128xbf16, #tpu.memory_space<vmem>>, %arg6: memref<1x128xf32, #tpu.memory_space<vmem>>, %arg7: memref<128x128xbf16, #tpu.memory_space<vmem>>, %arg8: memref<1x128xf32, #tpu.memory_space<vmem>>, %arg9: memref<128x128xbf16, #tpu.memory_space<vmem>>, %arg10: memref<1x128xf32, #tpu.memory_space<vmem>>, %arg11: memref<8x128xf32, #tpu.memory_space<vmem>>, %arg12: memref<8x128xf32, #tpu.memory_space<vmem>>) attributes {dimension_semantics = [#tpu.dimension_semantics<parallel>, #tpu.dimension_semantics<arbitrary>], iteration_bounds = array<i64: 1, 1>, scalar_prefetch = 0 : i64, scratch_operands = 1 : i64, tpu.core_type = #tpu.core_type<tc>, window_params = [{transform_indices = @transform_0, window_bounds = array<i64: 8, 128>}, {pipeline_mode = #tpu.pipeline_mode<synchronous>, transform_indices = @transform_1, window_bounds = array<i64: 128, 128>}, {pipeline_mode = #tpu.pipeline_mode<synchronous>, transform_indices = @transform_2, window_bounds = array<i64: 1, 128>}, {pipeline_mode = #tpu.pipeline_mode<synchronous>, transform_indices = @transform_3, window_bounds = array<i64: 128, 128>}, {pipeline_mode = #tpu.pipeline_mode<synchronous>, transform_indices = @transform_4, window_bounds = array<i64: 1, 128>}, {pipeline_mode = #tpu.pipeline_mode<synchronous>, transform_indices = @transform_5, window_bounds = array<i64: 128, 128>}, {pipeline_mode = #tpu.pipeline_mode<synchronous>, transform_indices = @transform_6, window_bounds = array<i64: 1, 128>}, {pipeline_mode = #tpu.pipeline_mode<synchronous>, transform_indices = @transform_7, window_bounds = array<i64: 128, 128>}, {pipeline_mode = #tpu.pipeline_mode<synchronous>, transform_indices = @transform_8, window_bounds = array<i64: 1, 128>}, {transform_indices = @transform_9, window_bounds = array<i64: 8, 128>}]} {
    %c0_i32 = arith.constant 0 : i32
    %0 = arith.cmpi eq, %arg1, %c0_i32 : i32
    %1 = arith.extui %0 : i1 to i32
    %c0_i32_0 = arith.constant 0 : i32
    %2 = arith.cmpi ne, %1, %c0_i32_0 : i32
    scf.if %2 {
      %cst_10 = arith.constant 0.000000e+00 : f32
      %13 = vector.broadcast %cst_10 : f32 to vector<8x128xf32>
      %c0_11 = arith.constant 0 : index
      %c0_12 = arith.constant 0 : index
      %14 = vector.load %arg12[%c0_11, %c0_12] : memref<8x128xf32, #tpu.memory_space<vmem>>, vector<8x128xf32>
      tpu.vector_store %arg12[%c0_11, %c0_12], %13 {strides = array<i32>} : memref<8x128xf32, #tpu.memory_space<vmem>>, vector<8x128xf32>,
    } else {
    }
    %c0 = arith.constant 0 : index
    %c0_1 = arith.constant 0 : index
    %3 = vector.load %arg12[%c0, %c0_1] : memref<8x128xf32, #tpu.memory_space<vmem>>, vector<8x128xf32>
    %c0_2 = arith.constant 0 : index
    %c0_3 = arith.constant 0 : index
    %4 = vector.load %arg2[%c0_2, %c0_3] : memref<8x128xf32, #tpu.memory_space<vmem>>, vector<8x128xf32>
    %5 = arith.truncf %4 : vector<8x128xf32> to vector<8x128xbf16>
    %c0_4 = arith.constant 0 : index
    %c0_5 = arith.constant 0 : index
    %6 = vector.load %arg3[%c0_4, %c0_5] : memref<128x128xbf16, #tpu.memory_space<vmem>>, vector<128x128xbf16>
    %cst = arith.constant dense<0.000000e+00> : vector<8x128xf32>
    %7 = tpu.matmul %5, %6, %cst {dimension_numbers = #tpu.dot_dimension_numbers<[1], [0], [0], [1], [0, 0, 1, 1], [], []>} : vector<8x128xbf16>, vector<128x128xbf16>, vector<8x128xf32> -> vector<8x128xf32>
    %8 = arith.addf %3, %7 : vector<8x128xf32>
    %c0_6 = arith.constant 0 : index
    %c0_7 = arith.constant 0 : index
    %9 = vector.load %arg12[%c0_6, %c0_7] : memref<8x128xf32, #tpu.memory_space<vmem>>, vector<8x128xf32>
    tpu.vector_store %arg12[%c0_6, %c0_7], %8 {strides = array<i32>} : memref<8x128xf32, #tpu.memory_space<vmem>>, vector<8x128xf32>,
    %c0_i32_8 = arith.constant 0 : i32
    %10 = arith.cmpi eq, %arg1, %c0_i32_8 : i32
    %11 = arith.extui %10 : i1 to i32
    %c0_i32_9 = arith.constant 0 : i32
    %12 = arith.cmpi ne, %11, %c0_i32_9 : i32
    scf.if %12 {
      %c0_10 = arith.constant 0 : index
      %c0_11 = arith.constant 0 : index
      %13 = vector.load %arg12[%c0_10, %c0_11] : memref<8x128xf32, #tpu.memory_space<vmem>>, vector<8x128xf32>
      %c0_12 = arith.constant 0 : index
      %c0_13 = arith.constant 0 : index
      %14 = vector.load %arg4[%c0_12, %c0_13] : memref<1x128xf32, #tpu.memory_space<vmem>>, vector<1x128xf32>
      %15 = vector.broadcast %14 : vector<1x128xf32> to vector<8x128xf32>
      %16 = arith.addf %13, %15 : vector<8x128xf32>
      %cst_14 = arith.constant dense<0.000000e+00> : vector<8xf32>
      %17 = vector.multi_reduction <add>, %16, %cst_14 [1] : vector<8x128xf32> to vector<8xf32>
      %18 = vector.shape_cast %17 : vector<8xf32> to vector<8x1xf32>
      %cst_15 = arith.constant 3.125000e-02 : f32
      %19 = vector.broadcast %cst_15 : f32 to vector<8x1xf32>
      %20 = arith.mulf %18, %19 : vector<8x1xf32>
      %21 = vector.broadcast %20 : vector<8x1xf32> to vector<8x128xf32>
      %22 = arith.subf %16, %21 : vector<8x128xf32>
      %23 = tpu.iota {dimensions = array<i32: 1>} : vector<8x128xi32>
      %c32_i32 = arith.constant 32 : i32
      %24 = vector.broadcast %c32_i32 : i32 to vector<8x128xi32>
      %25 = arith.cmpi slt, %23, %24 : vector<8x128xi32>
      %cst_16 = arith.constant 0.000000e+00 : f32
      %26 = vector.broadcast %cst_16 : f32 to vector<8x128xf32>
      %27 = arith.select %25, %22, %26 : vector<8x128xi1>, vector<8x128xf32>
      %28 = arith.mulf %27, %27 : vector<8x128xf32>
      %cst_17 = arith.constant dense<0.000000e+00> : vector<8xf32>
      %29 = vector.multi_reduction <add>, %28, %cst_17 [1] : vector<8x128xf32> to vector<8xf32>
      %30 = vector.shape_cast %29 : vector<8xf32> to vector<8x1xf32>
      %cst_18 = arith.constant 3.125000e-02 : f32
      %31 = vector.broadcast %cst_18 : f32 to vector<8x1xf32>
      %32 = arith.mulf %30, %31 : vector<8x1xf32>
      %cst_19 = arith.constant 9.99999974E-6 : f32
      %33 = vector.broadcast %cst_19 : f32 to vector<8x1xf32>
      %34 = arith.addf %32, %33 : vector<8x1xf32>
      %35 = math.rsqrt %34 : vector<8x1xf32>
      %36 = vector.broadcast %35 : vector<8x1xf32> to vector<8x128xf32>
      %37 = arith.mulf %22, %36 : vector<8x128xf32>
      %cst_20 = arith.constant 0.000000e+00 : f32
      %38 = vector.broadcast %cst_20 : f32 to vector<8x128xf32>
      %39 = arith.maximumf %37, %38 : vector<8x128xf32>
      %cst_21 = arith.constant 0.000000e+00 : f32
      %40 = vector.broadcast %cst_21 : f32 to vector<8x128xf32>
      %41 = arith.select %25, %39, %40 : vector<8x128xi1>, vector<8x128xf32>
      %42 = arith.truncf %41 : vector<8x128xf32> to vector<8x128xbf16>
      %c0_22 = arith.constant 0 : index
      %c0_23 = arith.constant 0 : index
      %43 = vector.load %arg5[%c0_22, %c0_23] : memref<128x128xbf16, #tpu.memory_space<vmem>>, vector<128x128xbf16>
      %cst_24 = arith.constant dense<0.000000e+00> : vector<8x128xf32>
      %44 = tpu.matmul %42, %43, %cst_24 {dimension_numbers = #tpu.dot_dimension_numbers<[1], [0], [0], [1], [0, 0, 1, 1], [], []>} : vector<8x128xbf16>, vector<128x128xbf16>, vector<8x128xf32> -> vector<8x128xf32>
      %c0_25 = arith.constant 0 : index
      %c0_26 = arith.constant 0 : index
      %45 = vector.load %arg6[%c0_25, %c0_26] : memref<1x128xf32, #tpu.memory_space<vmem>>, vector<1x128xf32>
      %46 = vector.broadcast %45 : vector<1x128xf32> to vector<8x128xf32>
      %47 = arith.addf %44, %46 : vector<8x128xf32>
      %cst_27 = arith.constant dense<0.000000e+00> : vector<8xf32>
      %48 = vector.multi_reduction <add>, %47, %cst_27 [1] : vector<8x128xf32> to vector<8xf32>
      %49 = vector.shape_cast %48 : vector<8xf32> to vector<8x1xf32>
      %cst_28 = arith.constant 3.125000e-02 : f32
      %50 = vector.broadcast %cst_28 : f32 to vector<8x1xf32>
      %51 = arith.mulf %49, %50 : vector<8x1xf32>
      %52 = vector.broadcast %51 : vector<8x1xf32> to vector<8x128xf32>
      %53 = arith.subf %47, %52 : vector<8x128xf32>
      %cst_29 = arith.constant 0.000000e+00 : f32
      %54 = vector.broadcast %cst_29 : f32 to vector<8x128xf32>
      %55 = arith.select %25, %53, %54 : vector<8x128xi1>, vector<8x128xf32>
      %56 = arith.mulf %55, %55 : vector<8x128xf32>
      %cst_30 = arith.constant dense<0.000000e+00> : vector<8xf32>
      %57 = vector.multi_reduction <add>, %56, %cst_30 [1] : vector<8x128xf32> to vector<8xf32>
      %58 = vector.shape_cast %57 : vector<8xf32> to vector<8x1xf32>
      %cst_31 = arith.constant 3.125000e-02 : f32
      %59 = vector.broadcast %cst_31 : f32 to vector<8x1xf32>
      %60 = arith.mulf %58, %59 : vector<8x1xf32>
      %cst_32 = arith.constant 9.99999974E-6 : f32
      %61 = vector.broadcast %cst_32 : f32 to vector<8x1xf32>
      %62 = arith.addf %60, %61 : vector<8x1xf32>
      %63 = math.rsqrt %62 : vector<8x1xf32>
      %64 = vector.broadcast %63 : vector<8x1xf32> to vector<8x128xf32>
      %65 = arith.mulf %53, %64 : vector<8x128xf32>
      %cst_33 = arith.constant 0.000000e+00 : f32
      %66 = vector.broadcast %cst_33 : f32 to vector<8x128xf32>
      %67 = arith.maximumf %65, %66 : vector<8x128xf32>
      %cst_34 = arith.constant 0.000000e+00 : f32
      %68 = vector.broadcast %cst_34 : f32 to vector<8x128xf32>
      %69 = arith.select %25, %67, %68 : vector<8x128xi1>, vector<8x128xf32>
      %70 = arith.truncf %69 : vector<8x128xf32> to vector<8x128xbf16>
      %c0_35 = arith.constant 0 : index
      %c0_36 = arith.constant 0 : index
      %71 = vector.load %arg7[%c0_35, %c0_36] : memref<128x128xbf16, #tpu.memory_space<vmem>>, vector<128x128xbf16>
      %cst_37 = arith.constant dense<0.000000e+00> : vector<8x128xf32>
      %72 = tpu.matmul %70, %71, %cst_37 {dimension_numbers = #tpu.dot_dimension_numbers<[1], [0], [0], [1], [0, 0, 1, 1], [], []>} : vector<8x128xbf16>, vector<128x128xbf16>, vector<8x128xf32> -> vector<8x128xf32>
      %c0_38 = arith.constant 0 : index
      %c0_39 = arith.constant 0 : index
      %73 = vector.load %arg8[%c0_38, %c0_39] : memref<1x128xf32, #tpu.memory_space<vmem>>, vector<1x128xf32>
      %74 = vector.broadcast %73 : vector<1x128xf32> to vector<8x128xf32>
      %75 = arith.addf %72, %74 : vector<8x128xf32>
      %cst_40 = arith.constant dense<0.000000e+00> : vector<8xf32>
      %76 = vector.multi_reduction <add>, %75, %cst_40 [1] : vector<8x128xf32> to vector<8xf32>
      %77 = vector.shape_cast %76 : vector<8xf32> to vector<8x1xf32>
      %cst_41 = arith.constant 3.125000e-02 : f32
      %78 = vector.broadcast %cst_41 : f32 to vector<8x1xf32>
      %79 = arith.mulf %77, %78 : vector<8x1xf32>
      %80 = vector.broadcast %79 : vector<8x1xf32> to vector<8x128xf32>
      %81 = arith.subf %75, %80 : vector<8x128xf32>
      %cst_42 = arith.constant 0.000000e+00 : f32
      %82 = vector.broadcast %cst_42 : f32 to vector<8x128xf32>
      %83 = arith.select %25, %81, %82 : vector<8x128xi1>, vector<8x128xf32>
      %84 = arith.mulf %83, %83 : vector<8x128xf32>
      %cst_43 = arith.constant dense<0.000000e+00> : vector<8xf32>
      %85 = vector.multi_reduction <add>, %84, %cst_43 [1] : vector<8x128xf32> to vector<8xf32>
      %86 = vector.shape_cast %85 : vector<8xf32> to vector<8x1xf32>
      %cst_44 = arith.constant 3.125000e-02 : f32
      %87 = vector.broadcast %cst_44 : f32 to vector<8x1xf32>
      %88 = arith.mulf %86, %87 : vector<8x1xf32>
      %cst_45 = arith.constant 9.99999974E-6 : f32
      %89 = vector.broadcast %cst_45 : f32 to vector<8x1xf32>
      %90 = arith.addf %88, %89 : vector<8x1xf32>
      %91 = math.rsqrt %90 : vector<8x1xf32>
      %92 = vector.broadcast %91 : vector<8x1xf32> to vector<8x128xf32>
      %93 = arith.mulf %81, %92 : vector<8x128xf32>
      %cst_46 = arith.constant 0.000000e+00 : f32
      %94 = vector.broadcast %cst_46 : f32 to vector<8x128xf32>
      %95 = arith.maximumf %93, %94 : vector<8x128xf32>
      %cst_47 = arith.constant 0.000000e+00 : f32
      %96 = vector.broadcast %cst_47 : f32 to vector<8x128xf32>
      %97 = arith.select %25, %95, %96 : vector<8x128xi1>, vector<8x128xf32>
      %98 = arith.truncf %97 : vector<8x128xf32> to vector<8x128xbf16>
      %c0_48 = arith.constant 0 : index
      %c0_49 = arith.constant 0 : index
      %99 = vector.load %arg9[%c0_48, %c0_49] : memref<128x128xbf16, #tpu.memory_space<vmem>>, vector<128x128xbf16>
      %cst_50 = arith.constant dense<0.000000e+00> : vector<8x128xf32>
      %100 = tpu.matmul %98, %99, %cst_50 {dimension_numbers = #tpu.dot_dimension_numbers<[1], [0], [0], [1], [0, 0, 1, 1], [], []>} : vector<8x128xbf16>, vector<128x128xbf16>, vector<8x128xf32> -> vector<8x128xf32>
      %c0_51 = arith.constant 0 : index
      %c0_52 = arith.constant 0 : index
      %101 = vector.load %arg10[%c0_51, %c0_52] : memref<1x128xf32, #tpu.memory_space<vmem>>, vector<1x128xf32>
      %102 = vector.broadcast %101 : vector<1x128xf32> to vector<8x128xf32>
      %103 = arith.addf %100, %102 : vector<8x128xf32>
      %c0_53 = arith.constant 0 : index
      %c0_54 = arith.constant 0 : index
      %104 = vector.load %arg11[%c0_53, %c0_54] : memref<8x128xf32, #tpu.memory_space<vmem>>, vector<8x128xf32>
      tpu.vector_store %arg11[%c0_53, %c0_54], %103 {strides = array<i32>} : memref<8x128xf32, #tpu.memory_space<vmem>>, vector<8x128xf32>,
    } else {
    }
    return
  }
  func.func @transform_0(%arg0: i32, %arg1: i32) -> (i32, i32) {
    %c0_i32 = arith.constant 0 : i32
    return %arg0, %arg1 : i32, i32
  }
  func.func @transform_1(%arg0: i32, %arg1: i32) -> (i32, i32) {
    %c0_i32 = arith.constant 0 : i32
    %c0_i32_0 = arith.constant 0 : i32
    %c0_i32_1 = arith.constant 0 : i32
    return %c0_i32, %c0_i32_0 : i32, i32
  }
  func.func @transform_2(%arg0: i32, %arg1: i32) -> (i32, i32) {
    %c0_i32 = arith.constant 0 : i32
    %c0_i32_0 = arith.constant 0 : i32
    %c0_i32_1 = arith.constant 0 : i32
    return %c0_i32, %c0_i32_0 : i32, i32
  }
  func.func @transform_3(%arg0: i32, %arg1: i32) -> (i32, i32) {
    %c0_i32 = arith.constant 0 : i32
    %c0_i32_0 = arith.constant 0 : i32
    %c0_i32_1 = arith.constant 0 : i32
    return %c0_i32, %c0_i32_0 : i32, i32
  }
  func.func @transform_4(%arg0: i32, %arg1: i32) -> (i32, i32) {
    %c0_i32 = arith.constant 0 : i32
    %c0_i32_0 = arith.constant 0 : i32
    %c0_i32_1 = arith.constant 0 : i32
    return %c0_i32, %c0_i32_0 : i32, i32
  }
  func.func @transform_5(%arg0: i32, %arg1: i32) -> (i32, i32) {
    %c0_i32 = arith.constant 0 : i32
    %c0_i32_0 = arith.constant 0 : i32
    %c0_i32_1 = arith.constant 0 : i32
    return %c0_i32, %c0_i32_0 : i32, i32
  }
  func.func @transform_6(%arg0: i32, %arg1: i32) -> (i32, i32) {
    %c0_i32 = arith.constant 0 : i32
    %c0_i32_0 = arith.constant 0 : i32
    %c0_i32_1 = arith.constant 0 : i32
    return %c0_i32, %c0_i32_0 : i32, i32
  }
  func.func @transform_7(%arg0: i32, %arg1: i32) -> (i32, i32) {
    %c0_i32 = arith.constant 0 : i32
    %c0_i32_0 = arith.constant 0 : i32
    %c0_i32_1 = arith.constant 0 : i32
    return %c0_i32, %c0_i32_0 : i32, i32
  }
  func.func @transform_8(%arg0: i32, %arg1: i32) -> (i32, i32) {
    %c0_i32 = arith.constant 0 : i32
    %c0_i32_0 = arith.constant 0 : i32
    %c0_i32_1 = arith.constant 0 : i32
    return %c0_i32, %c0_i32_0 : i32, i32
  }
  func.func @transform_9(%arg0: i32, %arg1: i32) -> (i32, i32) {
    %c0_i32 = arith.constant 0 : i32
    %c0_i32_0 = arith.constant 0 : i32
    return %arg0, %c0_i32 : i32, i32
  }
}

</mosaic_0001>

<bundles_post_ra>
// kernel: tpu_custom_call.1
= control target key start
LH: loop header
LB: loop body
LE: loop exit
PB: predicated region body
PF: predicated region fallthrough
CT: control target
= control target key end

     0   :  { %14 = vsyncpa [#allocation4], 0  ;;  %s1126_s0 = inlined_call_operand.hbm [shape: f32[8,128], index: 0, kind: input, shape index: {}]   ;;  %s1127_s1 = inlined_call_operand.hbm [shape: bf16[128,128], index: 1, kind: input, shape index: {}]   ;;  %s1128_s2 = inlined_call_operand.vmem [shape: f32[1,128], index: 2, kind: input, shape index: {}]   ;;  %s1129_s3 = inlined_call_operand.hbm [shape: bf16[128,128], index: 3, kind: input, shape index: {}]   ;;  %s1130_s4 = inlined_call_operand.vmem [shape: f32[1,128], index: 4, kind: input, shape index: {}]   ;;  %s1131_s5 = inlined_call_operand.hbm [shape: bf16[128,128], index: 5, kind: input, shape index: {}]   ;;  %s1132_s6 = inlined_call_operand.vmem [shape: f32[1,128], index: 6, kind: input, shape index: {}]   ;;  %s1133_s7 = inlined_call_operand.hbm [shape: bf16[128,128], index: 7, kind: input, shape index: {}]   ;;  %s1134_s8 = inlined_call_operand.vmem [shape: f32[1,128], index: 8, kind: input, shape index: {}]   ;;  %s1135_s9 = inlined_call_operand.hbm [shape: f32[8,128], index: 9, kind: output, shape index: {}]  }
   0x1   :  { %15 = vsyncpa [#allocation7], 0 }
   0x2   :  { %16 = vsyncpa [#allocation10], 0 }
   0x3   :  { %17 = vsyncpa [#allocation5], 0  ;;  %s962_s30 = smov [#allocation6]  }
   0x4   :  { %s33_s10 = sshll.u32 %s962_s30, 4  ;;  %s34_s10 = int_to_ptr.vmem [resolvable:$true] %s33_s10 }
   0x5   :  { %s842_s11 = scalar_lea.vmem %s34_s10, 1024  ;;  %p847_p1 = scmp.lt.s32.totalorder %s34_s10, %s34_s10 }
   0x6   :  { %p843_p0 = scmp.ne.s32.totalorder %s34_s10, %s842_s11  ;;  %p848_p2 = scmp.lt.s32.totalorder %s842_s11, %s842_s11 }
   0x8   :  { %p849_p3 = por %p848_p2, %p847_p1 }
   0xa   :  { %p850_p4 = pnand %p849_p3, %p843_p0 }
   0xc   :  { %853 = shalt.err (!%p850_p4)
}
   0xd   :  { %s963_s12 = smov 64   ;;  %s964_s13 = smov 4  }
   0xe   :  { %39 = dma.hbm_to_vmem [thread:$0]  %s1127_s1, 1024, %s34_s10, [#allocation7], %s963_s12, %s963_s12, %s964_s13  }
   0xf   :  { %s965_s16 = smov [#allocation9]   ;;  %s966_s18 = smov [#allocation3]  }
  0x10   :  { %s61_s17 = sshll.u32 %s965_s16, 4  ;;  %s24_s19 = sshll.u32 %s966_s18, 4  ;;  %s62_s17 = int_to_ptr.vmem [resolvable:$true] %s61_s17  ;;  %s25_s19 = int_to_ptr.vmem [resolvable:$true] %s24_s19 }
  0x11   :  { %s862_s20 = scalar_lea.vmem %s62_s17, 1024  ;;  %p867_p6 = scmp.lt.s32.totalorder %s62_s17, %s62_s17 }
  0x12   :  { %p863_p5 = scmp.ne.s32.totalorder %s62_s17, %s862_s20  ;;  %p868_p7 = scmp.lt.s32.totalorder %s862_s20, %s862_s20 }
  0x14   :  { %p869_p8 = por %p868_p7, %p867_p6 }
  0x16   :  { %p870_p9 = pnand %p869_p8, %p863_p5 }
  0x18   :  { %873 = shalt.err (!%p870_p9)
}
  0x19   :  { %67 = dma.hbm_to_vmem [thread:$0]  %s1131_s5, 1024, %s62_s17, [#allocation10], %s963_s12, %s963_s12, %s964_s13  }
  0x1a   :  { %s882_s1 = scalar_lea.vmem %s25_s19, 128  ;;  %p887_p11 = scmp.lt.s32.totalorder %s25_s19, %s25_s19 }
  0x1b   :  { %p883_p10 = scmp.ne.s32.totalorder %s25_s19, %s882_s1  ;;  %p888_p12 = scmp.lt.s32.totalorder %s882_s1, %s882_s1 }
  0x1d   :  { %p889_p13 = por %p888_p12, %p887_p11 }
  0x1f   :  { %p890_p0 = pnand %p889_p13, %p883_p10 }
  0x21   :  { %893 = shalt.err (!%p890_p0)
}
  0x22   :  { %27 = dma.hbm_to_vmem [thread:$0]  %s1126_s0, 128, %s25_s19, [#allocation4]  }
  0x23   :  { %s967_s25 = smov [#allocation8]   ;;  %s968_s27 = smov [#allocation11]  }
  0x24   :  { %s47_s26 = sshll.u32 %s967_s25, 4  ;;  %s75_s28 = sshll.u32 %s968_s27, 4  ;;  %s48_s26 = int_to_ptr.vmem [resolvable:$true] %s47_s26  ;;  %s76_s28 = int_to_ptr.vmem [resolvable:$true] %s75_s28 }
  0x25   :  { %s902_s29 = scalar_lea.vmem %s48_s26, 1024  ;;  %p907_p2 = scmp.lt.s32.totalorder %s48_s26, %s48_s26 }
  0x26   :  { %p903_p1 = scmp.ne.s32.totalorder %s48_s26, %s902_s29  ;;  %p908_p3 = scmp.lt.s32.totalorder %s902_s29, %s902_s29 }
  0x28   :  { %p909_p4 = por %p908_p3, %p907_p2 }
  0x2a   :  { %p910_p5 = pnand %p909_p4, %p903_p1 }
  0x2c   :  { %913 = shalt.err (!%p910_p5)
}
  0x2d   :  { %53 = dma.hbm_to_vmem [thread:$0]  %s1129_s3, 1024, %s48_s26, [#allocation7], %s963_s12, %s963_s12, %s964_s13  }
  0x2e   :  { %s922_s0 = scalar_lea.vmem %s76_s28, 1024  ;;  %p927_p7 = scmp.lt.s32.totalorder %s76_s28, %s76_s28 }
  0x2f   :  { %p923_p6 = scmp.ne.s32.totalorder %s76_s28, %s922_s0  ;;  %p928_p8 = scmp.lt.s32.totalorder %s922_s0, %s922_s0 }
  0x31   :  { %p929_p9 = por %p928_p8, %p927_p7 }
  0x33   :  { %p930_p10 = pnand %p929_p9, %p923_p6 }
  0x35   :  { %933 = shalt.err (!%p930_p10)
}
  0x36   :  { %81 = dma.hbm_to_vmem [thread:$0]  %s1133_s7, 1024, %s76_s28, [#allocation10], %s963_s12, %s963_s12, %s964_s13  }
  0x37   :  { %954 = dma.done.wait [#allocation4], 128  }
  0x38   :  { %955 = vsyncadd [#allocation4], 4294967168 }
  0x39   :  { %956 = dma.done.wait [#allocation7], 2048  }
  0x3a   :  { %957 = vsyncadd [#allocation7], 4294965248 }
  0x3b   :  { %958 = dma.done.wait [#allocation10], 2048  }
  0x3c   :  { %959 = vsyncadd [#allocation10], 4294965248  ;;  %v969_v0 = vmov 0.0   ;;  %vm970_vm0 = vmmov 0   ;;  %v796_v1 = vld [vmem:[#allocation6 + $0x38] sm:$0xff]   ;;  %v797_v2 = vld [vmem:[#allocation6 + $0x30] sm:$0xff]   ;;  %v230_v19 = vlaneseq }
  0x3d   :  { %706 = vmatprep.subr.bf16.mxu0 %v969_v0  ;;  %722 = vmatprep.mubr.msk.bf16.mxu0 %vm970_vm0, %v969_v0  ;;  %v798_v3 = vld [vmem:[#allocation6 + $0x28] sm:$0xff]   ;;  %v799_v4 = vld [vmem:[#allocation6 + $0x20] sm:$0xff]   ;;  %v800_v5 = vld [vmem:[#allocation6 + $0x18] sm:$0xff]   ;;  %s971_s15 = smov [#allocation12]  }
  0x3e   :  { %726 = vmatprep.subr.bf16.mxu1 %v969_v0  ;;  %742 = vmatprep.mubr.msk.bf16.mxu1 %vm970_vm0, %v969_v0  ;;  %v801_v6 = vld [vmem:[#allocation6 + $0x10] sm:$0xff]   ;;  %v802_v7 = vld [vmem:[#allocation6 + $0x8] sm:$0xff]   ;;  %v803_v8 = vld [vmem:[#allocation6] sm:$0xff]   ;;  %v1070_v20 = vand.u32 127, %v230_v19  ;;  %s614_s16 = sshll.u32 %s971_s15, 4  ;;  %s615_s16 = int_to_ptr.vmem [resolvable:$true] %s614_s16 }
  0x3f   :  { %707 = vmatpush3.bf16.msra.mxu0 %v796_v1  ;;  %v106_v9 = vld [vmem:[#allocation3] sm:$0xff]  ;;  %v805_v18 = vld [vmem:[#allocation8 + $0x30] sm:$0xff]   ;;  %v806_v26 = vld [vmem:[#allocation8 + $0x28] sm:$0xff]   ;;  %s934_s17 = scalar_lea.vmem %s615_s16, 128  ;;  %p939_p12 = scmp.lt.s32.totalorder %s615_s16, %s615_s16 }
  0x40   :  { %708 = vmatprep.subr.bf16.mxu0 %v969_v0  ;;  %v107_v10 = vpack.c.bf16 %v106_v9, %v106_v9  ;;  %v633_v11 = vld [vmem:[%s1128_s2] ss:$0 sm:$0xff]  ;;  %vm232_vm1 = vcmp.lt.s32.totalorder %v1070_v20, 32  ;;  %v807_v27 = vld [vmem:[#allocation8 + $0x20] sm:$0xff]   ;;  %v809_v29 = vld [vmem:[#allocation8 + $0x10] sm:$0xff]   ;;  %p935_p11 = scmp.ne.s32.totalorder %s615_s16, %s934_s17  ;;  %p940_p13 = scmp.lt.s32.totalorder %s934_s17, %s934_s17 }
  0x41   :  { %v804_v17 = vld [vmem:[#allocation8 + $0x38] sm:$0xff]   ;;  %v810_v30 = vld [vmem:[#allocation8 + $0x8] sm:$0xff]   ;;  %v811_v31 = vld [vmem:[#allocation8] sm:$0xff]  }
  0x42   :  { %727 = vmatpush3.bf16.msra.mxu1 %v804_v17  ;;  %v808_v28 = vld [vmem:[#allocation8 + $0x18] sm:$0xff]   ;;  %vm1084_vm2 = vmpackc.low %vm232_vm1, %vm232_vm1  ;;  %v813_v47 = vld [vmem:[#allocation9 + $0x30] sm:$0xff]   ;;  %p941_p0 = por %p940_p13, %p939_p12 }
  0x43   :  { %709 = vmatpush3.bf16.msra.mxu0 %v797_v2  ;;  %728 = vmatprep.subr.bf16.mxu1 %v969_v0  ;;  %v634_v40 = vld [vmem:[%s1130_s4] ss:$0 sm:$0xff]  ;;  %v814_v53 = vld [vmem:[#allocation9 + $0x28] sm:$0xff]   ;;  %v815_v54 = vld [vmem:[#allocation9 + $0x20] sm:$0xff]  }
  0x44   :  { %710 = vmatprep.subr.bf16.mxu0 %v969_v0  ;;  %v812_v46 = vld [vmem:[#allocation9 + $0x38] sm:$0xff]   ;;  %v817_v56 = vld [vmem:[#allocation9 + $0x10] sm:$0xff]   ;;  %v818_v57 = vld [vmem:[#allocation9 + $0x8] sm:$0xff]   ;;  %p942_p1 = pnand %p941_p0, %p935_p11 }
  0x45   :  { %v816_v55 = vld [vmem:[#allocation9 + $0x18] sm:$0xff]   ;;  %v819_v58 = vld [vmem:[#allocation9] sm:$0xff]   ;;  %v825_v19 = vld [vmem:[#allocation11 + $0x10] sm:$0xff]  }
  0x46   :  { %729 = vmatpush3.bf16.msra.mxu1 %v805_v18  ;;  %v820_v9 = vld [vmem:[#allocation11 + $0x38] sm:$0xff]   ;;  %v823_v17 = vld [vmem:[#allocation11 + $0x20] sm:$0xff]  }
  0x47   :  { %711 = vmatpush3.bf16.msra.mxu0 %v798_v3  ;;  %730 = vmatprep.subr.bf16.mxu1 %v969_v0  ;;  %v646_v3 = vld [vmem:[%s1132_s6] ss:$0 sm:$0xff]  ;;  %v827_v20 = vld [vmem:[#allocation11] sm:$0xff]  }
  0x48   :  { %712 = vmatprep.subr.bf16.mxu0 %v969_v0  ;;  %v824_v18 = vld [vmem:[#allocation11 + $0x18] sm:$0xff]  }
  0x4a   :  { %731 = vmatpush3.bf16.msra.mxu1 %v806_v26 }
  0x4b   :  { %713 = vmatpush3.bf16.msra.mxu0 %v799_v4  ;;  %732 = vmatprep.subr.bf16.mxu1 %v969_v0 }
  0x4c   :  { %714 = vmatprep.subr.bf16.mxu0 %v969_v0 }
  0x4e   :  { %733 = vmatpush3.bf16.msra.mxu1 %v807_v27 }
  0x4f   :  { %715 = vmatpush3.bf16.msra.mxu0 %v800_v5  ;;  %734 = vmatprep.subr.bf16.mxu1 %v969_v0 }
  0x50   :  { %716 = vmatprep.subr.bf16.mxu0 %v969_v0 }
  0x52   :  { %735 = vmatpush3.bf16.msra.mxu1 %v808_v28 }
  0x53   :  { %717 = vmatpush3.bf16.msra.mxu0 %v801_v6  ;;  %736 = vmatprep.subr.bf16.mxu1 %v969_v0 }
  0x54   :  { %718 = vmatprep.subr.bf16.mxu0 %v969_v0 }
  0x56   :  { %737 = vmatpush3.bf16.msra.mxu1 %v809_v29  ;;  %v658_v29 = vld [vmem:[%s1134_s8] ss:$0 sm:$0xff] }
  0x57   :  { %719 = vmatpush3.bf16.msra.mxu0 %v802_v7  ;;  %738 = vmatprep.subr.bf16.mxu1 %v969_v0 }
  0x58   :  { %720 = vmatprep.subr.bf16.mxu0 %v969_v0 }
  0x5a   :  { %739 = vmatpush3.bf16.msra.mxu1 %v810_v30 }
  0x5b   :  { %721 = vmatpush3.bf16.msra.mxu0 %v803_v8  ;;  %740 = vmatprep.subr.bf16.mxu1 %v969_v0 }
  0x5c   :  { %746 = vmatprep.subr.bf16.mxu0 %v969_v0 }
  0x5e   :  { %723 = vmatmul.mubr.bf16.vlgmr.msra.gmra.mxu0 %v107_v10  ;;  %741 = vmatpush3.bf16.msra.mxu1 %v811_v31  ;;  %v821_v10 = vld [vmem:[#allocation11 + $0x30] sm:$0xff]  }
  0x5f   :  { %762 = vmatprep.mubr.msk.bf16.mxu0 %vm970_vm0, %v969_v0  ;;  %766 = vmatprep.subr.bf16.mxu1 %v969_v0 }
  0x60   :  { %747 = vmatpush3.bf16.msra.mxu0 %v812_v46 }
  0x61   :  { %748 = vmatprep.subr.bf16.mxu0 %v969_v0 }
  0x64   :  { %749 = vmatpush3.bf16.msra.mxu0 %v813_v47 }
  0x65   :  { %750 = vmatprep.subr.bf16.mxu0 %v969_v0 }
  0x68   :  { %751 = vmatpush3.bf16.msra.mxu0 %v814_v53 }
  0x69   :  { %752 = vmatprep.subr.bf16.mxu0 %v969_v0 }
  0x6c   :  { %753 = vmatpush3.bf16.msra.mxu0 %v815_v54 }
  0x6d   :  { %754 = vmatprep.subr.bf16.mxu0 %v969_v0 }
  0x70   :  { %755 = vmatpush3.bf16.msra.mxu0 %v816_v55 }
  0x71   :  { %756 = vmatprep.subr.bf16.mxu0 %v969_v0 }
  0x74   :  { %757 = vmatpush3.bf16.msra.mxu0 %v817_v56 }
  0x75   :  { %758 = vmatprep.subr.bf16.mxu0 %v969_v0 }
  0x78   :  { %759 = vmatpush3.bf16.msra.mxu0 %v818_v57 }
  0x79   :  { %760 = vmatprep.subr.bf16.mxu0 %v969_v0 }
  0x7c   :  { %761 = vmatpush3.bf16.msra.mxu0 %v819_v58 }
 0x11e   :  { %v206_v12 = vpop.f32.mrf.mxu0 }
 0x11f   :  { %v225_v13 = vadd.f32 %v633_v11, %v206_v12 }
 0x120   :  { %v724_v14 = vpop.f32.mrf.mxu0 }
 0x121   :  { %226 = vadd.xlane.f32.xlu0 %v225_v13 }
 0x122   :  { %v209_v15 = vpop.f32.mrf.mxu0 }
 0x124   :  { %v725_v16 = vpop.f32.mrf.mxu0 }
 0x125   :  { %v822_v16 = vld [vmem:[#allocation11 + $0x28] sm:$0xff]  }
 0x1aa   :  { %v227_v21 = vpop.xlane.xlu0 %226 }
 0x1ab   :  { %v228_v22 = vmul.f32 0.03125, %v227_v21  ;;  %v826_v21 = vld [vmem:[#allocation11 + $0x8] sm:$0xff]  }
 0x1ad   :  { %v229_v23 = vsub.f32 %v225_v13, %v228_v22 }
 0x1af   :  { %v233_v24 = vsel %vm232_vm1, %v229_v23, 0.0 }
 0x1b0   :  { %v234_v25 = vmul.f32 %v233_v24, %v233_v24 }
 0x1b2   :  { %235 = vadd.xlane.f32.xlu0 %v234_v25 }
 0x23b   :  { %v236_v32 = vpop.xlane.xlu0 %235 }
 0x23c   :  { %v237_v33 = vmul.f32 0.03125, %v236_v32 }
 0x23e   :  { %v238_v34 = vadd.f32 1e-05, %v237_v33 }
 0x240   :  { %828 = vrsqrt.f32 %v238_v34 }
 0x24d   :  { %v829_v35 = vpop.eup %828 }
 0x24e   :  { %v240_v36 = vmul.f32 %v829_v35, %v229_v23 }
 0x250   :  { %v241_v37 = vmax.f32 %v240_v36, 0.0 }
 0x252   :  { %v644_v39 = vpack.c.bf16 %v241_v37, %v241_v37 }
 0x254   :  { %743 = vmatmul.mubr.msk.bf16.vlgmr.msra.gmra.mxu1 %vm1084_vm2, %v644_v39 }
 0x255   :  { %782 = vmatprep.mubr.msk.bf16.mxu1 %vm970_vm0, %v969_v0  ;;  %767 = vmatpush3.bf16.msra.mxu1 %v820_v9 }
 0x256   :  { %768 = vmatprep.subr.bf16.mxu1 %v969_v0 }
 0x259   :  { %769 = vmatpush3.bf16.msra.mxu1 %v821_v10 }
 0x25a   :  { %770 = vmatprep.subr.bf16.mxu1 %v969_v0 }
 0x25d   :  { %771 = vmatpush3.bf16.msra.mxu1 %v822_v16 }
 0x25e   :  { %772 = vmatprep.subr.bf16.mxu1 %v969_v0 }
 0x261   :  { %773 = vmatpush3.bf16.msra.mxu1 %v823_v17 }
 0x262   :  { %774 = vmatprep.subr.bf16.mxu1 %v969_v0 }
 0x265   :  { %775 = vmatpush3.bf16.msra.mxu1 %v824_v18 }
 0x266   :  { %776 = vmatprep.subr.bf16.mxu1 %v969_v0 }
 0x269   :  { %777 = vmatpush3.bf16.msra.mxu1 %v825_v19 }
 0x26a   :  { %778 = vmatprep.subr.bf16.mxu1 %v969_v0 }
 0x26d   :  { %779 = vmatpush3.bf16.msra.mxu1 %v826_v21 }
 0x26e   :  { %780 = vmatprep.subr.bf16.mxu1 %v969_v0 }
 0x271   :  { %781 = vmatpush3.bf16.msra.mxu1 %v827_v20 }
 0x314   :  { %v349_v41 = vpop.f32.mrf.mxu1 }
 0x315   :  { %v350_v42 = vadd.f32 %v634_v40, %v349_v41 }
 0x316   :  { %v744_v43 = vpop.f32.mrf.mxu1 }
 0x317   :  { %355 = vadd.xlane.f32.xlu1 %v350_v42 }
 0x318   :  { %v352_v44 = vpop.f32.mrf.mxu1 }
 0x31a   :  { %v745_v45 = vpop.f32.mrf.mxu1 }
 0x3a0   :  { %v356_v48 = vpop.xlane.xlu1 %355 }
 0x3a1   :  { %v357_v49 = vmul.f32 0.03125, %v356_v48 }
 0x3a3   :  { %v358_v50 = vsub.f32 %v350_v42, %v357_v49 }
 0x3a5   :  { %v359_v51 = vsel %vm232_vm1, %v358_v50, 0.0 }
 0x3a6   :  { %v360_v52 = vmul.f32 %v359_v51, %v359_v51 }
 0x3a8   :  { %361 = vadd.xlane.f32.xlu1 %v360_v52 }
 0x431   :  { %v362_v59 = vpop.xlane.xlu1 %361 }
 0x432   :  { %v363_v60 = vmul.f32 0.03125, %v362_v59 }
 0x434   :  { %v364_v61 = vadd.f32 1e-05, %v363_v60 }
 0x436   :  { %830 = vrsqrt.f32 %v364_v61 }
 0x443   :  { %v831_v62 = vpop.eup %830 }
 0x444   :  { %v366_v63 = vmul.f32 %v831_v62, %v358_v50 }
 0x446   :  { %v367_v1 = vmax.f32 %v366_v63, 0.0 }
 0x448   :  { %v656_v2 = vpack.c.bf16 %v367_v1, %v367_v1 }
 0x44a   :  { %763 = vmatmul.mubr.msk.bf16.vlgmr.msra.gmra.mxu0 %vm1084_vm2, %v656_v2 }
 0x50a   :  { %v475_v4 = vpop.f32.mrf.mxu0 }
 0x50b   :  { %v476_v5 = vadd.f32 %v646_v3, %v475_v4 }
 0x50c   :  { %v764_v6 = vpop.f32.mrf.mxu0 }
 0x50d   :  { %481 = vadd.xlane.f32.xlu0 %v476_v5 }
 0x50e   :  { %v478_v7 = vpop.f32.mrf.mxu0 }
 0x510   :  { %v765_v8 = vpop.f32.mrf.mxu0 }
 0x596   :  { %v482_v11 = vpop.xlane.xlu0 %481 }
 0x597   :  { %v483_v12 = vmul.f32 0.03125, %v482_v11 }
 0x599   :  { %v484_v13 = vsub.f32 %v476_v5, %v483_v12 }
 0x59b   :  { %v485_v14 = vsel %vm232_vm1, %v484_v13, 0.0 }
 0x59c   :  { %v486_v15 = vmul.f32 %v485_v14, %v485_v14 }
 0x59e   :  { %487 = vadd.xlane.f32.xlu1 %v486_v15 }
 0x627   :  { %v488_v22 = vpop.xlane.xlu1 %487 }
 0x628   :  { %v489_v23 = vmul.f32 0.03125, %v488_v22 }
 0x62a   :  { %v490_v24 = vadd.f32 1e-05, %v489_v23 }
 0x62c   :  { %832 = vrsqrt.f32 %v490_v24 }
 0x639   :  { %v833_v25 = vpop.eup %832 }
 0x63a   :  { %v492_v26 = vmul.f32 %v833_v25, %v484_v13 }
 0x63c   :  { %v493_v27 = vmax.f32 %v492_v26, 0.0 }
 0x63e   :  { %v668_v28 = vpack.c.bf16 %v493_v27, %v493_v27 }
 0x640   :  { %783 = vmatmul.mubr.msk.bf16.vlgmr.msra.gmra.mxu1 %vm1084_vm2, %v668_v28 }
 0x700   :  { %v601_v30 = vpop.f32.mrf.mxu1 }
 0x701   :  { %v602_v0 = vadd.f32 %v658_v29, %v601_v30 }
 0x702   :  { %v784_v31 = vpop.f32.mrf.mxu1 }
 0x703   :  { %607 = vst [vmem:[#allocation12] sm:$0xff] %v602_v0 }
 0x704   :  { %v604_v32 = vpop.f32.mrf.mxu1 }
 0x705   :  { %945 = shalt.err (!%p942_p1)
}
 0x706   :  { %617 = dma.vmem_to_hbm [thread:$0]  %s615_s16, 128, %s1135_s9, [#allocation5]   ;;  %v785_v33 = vpop.f32.mrf.mxu1 }
 0x707   :  { %960 = dma.done.wait [#allocation5], 128  }
 0x708   :  { %961 = vsyncadd [#allocation5], 4294967168 }
 0x709   :  { %621 = vsyncpa [#allocation4], 1 }
 0x70a   :  { %622 = vsyncpa [#allocation7], 1 }
 0x70b   :  { %623 = vsyncpa [#allocation10], 1 }
 0x70c   :  { %624 = vsyncpa [#allocation5], 1 }

// kernel: tpu_custom_call.1
= control target key start
LH: loop header
LB: loop body
LE: loop exit
PB: predicated region body
PF: predicated region fallthrough
CT: control target
= control target key end

     0   :  { %14 = vsyncpa [#allocation4], 0  ;;  %s1126_s0 = inlined_call_operand.hbm [shape: f32[8,128], index: 0, kind: input, shape index: {}]   ;;  %s1127_s1 = inlined_call_operand.hbm [shape: bf16[128,128], index: 1, kind: input, shape index: {}]   ;;  %s1128_s2 = inlined_call_operand.vmem [shape: f32[1,128], index: 2, kind: input, shape index: {}]   ;;  %s1129_s3 = inlined_call_operand.hbm [shape: bf16[128,128], index: 3, kind: input, shape index: {}]   ;;  %s1130_s4 = inlined_call_operand.vmem [shape: f32[1,128], index: 4, kind: input, shape index: {}]   ;;  %s1131_s5 = inlined_call_operand.hbm [shape: bf16[128,128], index: 5, kind: input, shape index: {}]   ;;  %s1132_s6 = inlined_call_operand.vmem [shape: f32[1,128], index: 6, kind: input, shape index: {}]   ;;  %s1133_s7 = inlined_call_operand.hbm [shape: bf16[128,128], index: 7, kind: input, shape index: {}]   ;;  %s1134_s8 = inlined_call_operand.vmem [shape: f32[1,128], index: 8, kind: input, shape index: {}]   ;;  %s1135_s9 = inlined_call_operand.hbm [shape: f32[8,128], index: 9, kind: output, shape index: {}]  }
   0x1   :  { %15 = vsyncpa [#allocation7], 0 }
   0x2   :  { %16 = vsyncpa [#allocation10], 0 }
   0x3   :  { %17 = vsyncpa [#allocation5], 0  ;;  %s962_s30 = smov [#allocation6]  }
   0x4   :  { %s33_s10 = sshll.u32 %s962_s30, 4  ;;  %s34_s10 = int_to_ptr.vmem [resolvable:$true] %s33_s10 }
   0x5   :  { %s842_s11 = scalar_lea.vmem %s34_s10, 1024  ;;  %p847_p1 = scmp.lt.s32.totalorder %s34_s10, %s34_s10 }
   0x6   :  { %p843_p0 = scmp.ne.s32.totalorder %s34_s10, %s842_s11  ;;  %p848_p2 = scmp.lt.s32.totalorder %s842_s11, %s842_s11 }
   0x8   :  { %p849_p3 = por %p848_p2, %p847_p1 }
   0xa   :  { %p850_p4 = pnand %p849_p3, %p843_p0 }
   0xc   :  { %853 = shalt.err (!%p850_p4)
}
   0xd   :  { %s963_s12 = smov 64   ;;  %s964_s13 = smov 4  }
   0xe   :  { %39 = dma.hbm_to_vmem [thread:$0]  %s1127_s1, 1024, %s34_s10, [#allocation7], %s963_s12, %s963_s12, %s964_s13  }
   0xf   :  { %s965_s16 = smov [#allocation9]   ;;  %s966_s18 = smov [#allocation3]  }
  0x10   :  { %s61_s17 = sshll.u32 %s965_s16, 4  ;;  %s24_s19 = sshll.u32 %s966_s18, 4  ;;  %s62_s17 = int_to_ptr.vmem [resolvable:$true] %s61_s17  ;;  %s25_s19 = int_to_ptr.vmem [resolvable:$true] %s24_s19 }
  0x11   :  { %s862_s20 = scalar_lea.vmem %s62_s17, 1024  ;;  %p867_p6 = scmp.lt.s32.totalorder %s62_s17, %s62_s17 }
  0x12   :  { %p863_p5 = scmp.ne.s32.totalorder %s62_s17, %s862_s20  ;;  %p868_p7 = scmp.lt.s32.totalorder %s862_s20, %s862_s20 }
  0x14   :  { %p869_p8 = por %p868_p7, %p867_p6 }
  0x16   :  { %p870_p9 = pnand %p869_p8, %p863_p5 }
  0x18   :  { %873 = shalt.err (!%p870_p9)
}
  0x19   :  { %67 = dma.hbm_to_vmem [thread:$0]  %s1131_s5, 1024, %s62_s17, [#allocation10], %s963_s12, %s963_s12, %s964_s13  }
  0x1a   :  { %s882_s1 = scalar_lea.vmem %s25_s19, 128  ;;  %p887_p11 = scmp.lt.s32.totalorder %s25_s19, %s25_s19 }
  0x1b   :  { %p883_p10 = scmp.ne.s32.totalorder %s25_s19, %s882_s1  ;;  %p888_p12 = scmp.lt.s32.totalorder %s882_s1, %s882_s1 }
  0x1d   :  { %p889_p13 = por %p888_p12, %p887_p11 }
  0x1f   :  { %p890_p0 = pnand %p889_p13, %p883_p10 }
  0x21   :  { %893 = shalt.err (!%p890_p0)
}
  0x22   :  { %27 = dma.hbm_to_vmem [thread:$0]  %s1126_s0, 128, %s25_s19, [#allocation4]  }
  0x23   :  { %s967_s25 = smov [#allocation8]   ;;  %s968_s27 = smov [#allocation11]  }
  0x24   :  { %s47_s26 = sshll.u32 %s967_s25, 4  ;;  %s75_s28 = sshll.u32 %s968_s27, 4  ;;  %s48_s26 = int_to_ptr.vmem [resolvable:$true] %s47_s26  ;;  %s76_s28 = int_to_ptr.vmem [resolvable:$true] %s75_s28 }
  0x25   :  { %s902_s29 = scalar_lea.vmem %s48_s26, 1024  ;;  %p907_p2 = scmp.lt.s32.totalorder %s48_s26, %s48_s26 }
  0x26   :  { %p903_p1 = scmp.ne.s32.totalorder %s48_s26, %s902_s29  ;;  %p908_p3 = scmp.lt.s32.totalorder %s902_s29, %s902_s29 }
  0x28   :  { %p909_p4 = por %p908_p3, %p907_p2 }
  0x2a   :  { %p910_p5 = pnand %p909_p4, %p903_p1 }
  0x2c   :  { %913 = shalt.err (!%p910_p5)
}
  0x2d   :  { %53 = dma.hbm_to_vmem [thread:$0]  %s1129_s3, 1024, %s48_s26, [#allocation7], %s963_s12, %s963_s12, %s964_s13  }
  0x2e   :  { %s922_s0 = scalar_lea.vmem %s76_s28, 1024  ;;  %p927_p7 = scmp.lt.s32.totalorder %s76_s28, %s76_s28 }
  0x2f   :  { %p923_p6 = scmp.ne.s32.totalorder %s76_s28, %s922_s0  ;;  %p928_p8 = scmp.lt.s32.totalorder %s922_s0, %s922_s0 }
  0x31   :  { %p929_p9 = por %p928_p8, %p927_p7 }
  0x33   :  { %p930_p10 = pnand %p929_p9, %p923_p6 }
  0x35   :  { %933 = shalt.err (!%p930_p10)
}
  0x36   :  { %81 = dma.hbm_to_vmem [thread:$0]  %s1133_s7, 1024, %s76_s28, [#allocation10], %s963_s12, %s963_s12, %s964_s13  }
  0x37   :  { %954 = dma.done.wait [#allocation4], 128  }
  0x38   :  { %955 = vsyncadd [#allocation4], 4294967168 }
  0x39   :  { %956 = dma.done.wait [#allocation7], 2048  }
  0x3a   :  { %957 = vsyncadd [#allocation7], 4294965248 }
  0x3b   :  { %958 = dma.done.wait [#allocation10], 2048  }
  0x3c   :  { %959 = vsyncadd [#allocation10], 4294965248  ;;  %v969_v0 = vmov 0.0   ;;  %vm970_vm0 = vmmov 0   ;;  %v796_v1 = vld [vmem:[#allocation6 + $0x38] sm:$0xff]   ;;  %v797_v2 = vld [vmem:[#allocation6 + $0x30] sm:$0xff]   ;;  %v230_v19 = vlaneseq }
  0x3d   :  { %706 = vmatprep.subr.bf16.mxu0 %v969_v0  ;;  %722 = vmatprep.mubr.msk.bf16.mxu0 %vm970_vm0, %v969_v0  ;;  %v798_v3 = vld [vmem:[#allocation6 + $0x28] sm:$0xff]   ;;  %v799_v4 = vld [vmem:[#allocation6 + $0x20] sm:$0xff]   ;;  %v800_v5 = vld [vmem:[#allocation6 + $0x18] sm:$0xff]   ;;  %s971_s15 = smov [#allocation12]  }
  0x3e   :  { %726 = vmatprep.subr.bf16.mxu1 %v969_v0  ;;  %742 = vmatprep.mubr.msk.bf16.mxu1 %vm970_vm0, %v969_v0  ;;  %v801_v6 = vld [vmem:[#allocation6 + $0x10] sm:$0xff]   ;;  %v802_v7 = vld [vmem:[#allocation6 + $0x8] sm:$0xff]   ;;  %v803_v8 = vld [vmem:[#allocation6] sm:$0xff]   ;;  %v1070_v20 = vand.u32 127, %v230_v19  ;;  %s614_s16 = sshll.u32 %s971_s15, 4  ;;  %s615_s16 = int_to_ptr.vmem [resolvable:$true] %s614_s16 }
  0x3f   :  { %707 = vmatpush3.bf16.msra.mxu0 %v796_v1  ;;  %v106_v9 = vld [vmem:[#allocation3] sm:$0xff]  ;;  %v805_v18 = vld [vmem:[#allocation8 + $0x30] sm:$0xff]   ;;  %v806_v26 = vld [vmem:[#allocation8 + $0x28] sm:$0xff]   ;;  %s934_s17 = scalar_lea.vmem %s615_s16, 128  ;;  %p939_p12 = scmp.lt.s32.totalorder %s615_s16, %s615_s16 }
  0x40   :  { %708 = vmatprep.subr.bf16.mxu0 %v969_v0  ;;  %v107_v10 = vpack.c.bf16 %v106_v9, %v106_v9  ;;  %v633_v11 = vld [vmem:[%s1128_s2] ss:$0 sm:$0xff]  ;;  %vm232_vm1 = vcmp.lt.s32.totalorder %v1070_v20, 32  ;;  %v807_v27 = vld [vmem:[#allocation8 + $0x20] sm:$0xff]   ;;  %v809_v29 = vld [vmem:[#allocation8 + $0x10] sm:$0xff]   ;;  %p935_p11 = scmp.ne.s32.totalorder %s615_s16, %s934_s17  ;;  %p940_p13 = scmp.lt.s32.totalorder %s934_s17, %s934_s17 }
  0x41   :  { %v804_v17 = vld [vmem:[#allocation8 + $0x38] sm:$0xff]   ;;  %v810_v30 = vld [vmem:[#allocation8 + $0x8] sm:$0xff]   ;;  %v811_v31 = vld [vmem:[#allocation8] sm:$0xff]  }
  0x42   :  { %727 = vmatpush3.bf16.msra.mxu1 %v804_v17  ;;  %v808_v28 = vld [vmem:[#allocation8 + $0x18] sm:$0xff]   ;;  %vm1084_vm2 = vmpackc.low %vm232_vm1, %vm232_vm1  ;;  %v813_v47 = vld [vmem:[#allocation9 + $0x30] sm:$0xff]   ;;  %p941_p0 = por %p940_p13, %p939_p12 }
  0x43   :  { %709 = vmatpush3.bf16.msra.mxu0 %v797_v2  ;;  %728 = vmatprep.subr.bf16.mxu1 %v969_v0  ;;  %v634_v40 = vld [vmem:[%s1130_s4] ss:$0 sm:$0xff]  ;;  %v814_v53 = vld [vmem:[#allocation9 + $0x28] sm:$0xff]   ;;  %v815_v54 = vld [vmem:[#allocation9 + $0x20] sm:$0xff]  }
  0x44   :  { %710 = vmatprep.subr.bf16.mxu0 %v969_v0  ;;  %v812_v46 = vld [vmem:[#allocation9 + $0x38] sm:$0xff]   ;;  %v817_v56 = vld [vmem:[#allocation9 + $0x10] sm:$0xff]   ;;  %v818_v57 = vld [vmem:[#allocation9 + $0x8] sm:$0xff]   ;;  %p942_p1 = pnand %p941_p0, %p935_p11 }
  0x45   :  { %v816_v55 = vld [vmem:[#allocation9 + $0x18] sm:$0xff]   ;;  %v819_v58 = vld [vmem:[#allocation9] sm:$0xff]   ;;  %v825_v19 = vld [vmem:[#allocation11 + $0x10] sm:$0xff]  }
  0x46   :  { %729 = vmatpush3.bf16.msra.mxu1 %v805_v18  ;;  %v820_v9 = vld [vmem:[#allocation11 + $0x38] sm:$0xff]   ;;  %v823_v17 = vld [vmem:[#allocation11 + $0x20] sm:$0xff]  }
  0x47   :  { %711 = vmatpush3.bf16.msra.mxu0 %v798_v3  ;;  %730 = vmatprep.subr.bf16.mxu1 %v969_v0  ;;  %v646_v3 = vld [vmem:[%s1132_s6] ss:$0 sm:$0xff]  ;;  %v827_v20 = vld [vmem:[#allocation11] sm:$0xff]  }
  0x48   :  { %712 = vmatprep.subr.bf16.mxu0 %v969_v0  ;;  %v824_v18 = vld [vmem:[#allocation11 + $0x18] sm:$0xff]  }
  0x4a   :  { %731 = vmatpush3.bf16.msra.mxu1 %v806_v26 }
  0x4b   :  { %713 = vmatpush3.bf16.msra.mxu0 %v799_v4  ;;  %732 = vmatprep.subr.bf16.mxu1 %v969_v0 }
  0x4c   :  { %714 = vmatprep.subr.bf16.mxu0 %v969_v0 }
  0x4e   :  { %733 = vmatpush3.bf16.msra.mxu1 %v807_v27 }
  0x4f   :  { %715 = vmatpush3.bf16.msra.mxu0 %v800_v5  ;;  %734 = vmatprep.subr.bf16.mxu1 %v969_v0 }
  0x50   :  { %716 = vmatprep.subr.bf16.mxu0 %v969_v0 }
  0x52   :  { %735 = vmatpush3.bf16.msra.mxu1 %v808_v28 }
  0x53   :  { %717 = vmatpush3.bf16.msra.mxu0 %v801_v6  ;;  %736 = vmatprep.subr.bf16.mxu1 %v969_v0 }
  0x54   :  { %718 = vmatprep.subr.bf16.mxu0 %v969_v0 }
  0x56   :  { %737 = vmatpush3.bf16.msra.mxu1 %v809_v29  ;;  %v658_v29 = vld [vmem:[%s1134_s8] ss:$0 sm:$0xff] }
  0x57   :  { %719 = vmatpush3.bf16.msra.mxu0 %v802_v7  ;;  %738 = vmatprep.subr.bf16.mxu1 %v969_v0 }
  0x58   :  { %720 = vmatprep.subr.bf16.mxu0 %v969_v0 }
  0x5a   :  { %739 = vmatpush3.bf16.msra.mxu1 %v810_v30 }
  0x5b   :  { %721 = vmatpush3.bf16.msra.mxu0 %v803_v8  ;;  %740 = vmatprep.subr.bf16.mxu1 %v969_v0 }
  0x5c   :  { %746 = vmatprep.subr.bf16.mxu0 %v969_v0 }
  0x5e   :  { %723 = vmatmul.mubr.bf16.vlgmr.msra.gmra.mxu0 %v107_v10  ;;  %741 = vmatpush3.bf16.msra.mxu1 %v811_v31  ;;  %v821_v10 = vld [vmem:[#allocation11 + $0x30] sm:$0xff]  }
  0x5f   :  { %762 = vmatprep.mubr.msk.bf16.mxu0 %vm970_vm0, %v969_v0  ;;  %766 = vmatprep.subr.bf16.mxu1 %v969_v0 }
  0x60   :  { %747 = vmatpush3.bf16.msra.mxu0 %v812_v46 }
  0x61   :  { %748 = vmatprep.subr.bf16.mxu0 %v969_v0 }
  0x64   :  { %749 = vmatpush3.bf16.msra.mxu0 %v813_v47 }
  0x65   :  { %750 = vmatprep.subr.bf16.mxu0 %v969_v0 }
  0x68   :  { %751 = vmatpush3.bf16.msra.mxu0 %v814_v53 }
  0x69   :  { %752 = vmatprep.subr.bf16.mxu0 %v969_v0 }
  0x6c   :  { %753 = vmatpush3.bf16.msra.mxu0 %v815_v54 }
  0x6d   :  { %754 = vmatprep.subr.bf16.mxu0 %v969_v0 }
  0x70   :  { %755 = vmatpush3.bf16.msra.mxu0 %v816_v55 }
  0x71   :  { %756 = vmatprep.subr.bf16.mxu0 %v969_v0 }
  0x74   :  { %757 = vmatpush3.bf16.msra.mxu0 %v817_v56 }
  0x75   :  { %758 = vmatprep.subr.bf16.mxu0 %v969_v0 }
  0x78   :  { %759 = vmatpush3.bf16.msra.mxu0 %v818_v57 }
  0x79   :  { %760 = vmatprep.subr.bf16.mxu0 %v969_v0 }
  0x7c   :  { %761 = vmatpush3.bf16.msra.mxu0 %v819_v58 }
 0x11e   :  { %v206_v12 = vpop.f32.mrf.mxu0 }
 0x11f   :  { %v225_v13 = vadd.f32 %v633_v11, %v206_v12 }
 0x120   :  { %v724_v14 = vpop.f32.mrf.mxu0 }
 0x121   :  { %226 = vadd.xlane.f32.xlu0 %v225_v13 }
 0x122   :  { %v209_v15 = vpop.f32.mrf.mxu0 }
 0x124   :  { %v725_v16 = vpop.f32.mrf.mxu0 }
 0x125   :  { %v822_v16 = vld [vmem:[#allocation11 + $0x28] sm:$0xff]  }
 0x1aa   :  { %v227_v21 = vpop.xlane.xlu0 %226 }
 0x1ab   :  { %v228_v22 = vmul.f32 0.03125, %v227_v21  ;;  %v826_v21 = vld [vmem:[#allocation11 + $0x8] sm:$0xff]  }
 0x1ad   :  { %v229_v23 = vsub.f32 %v225_v13, %v228_v22 }
 0x1af   :  { %v233_v24 = vsel %vm232_vm1, %v229_v23, 0.0 }
 0x1b0   :  { %v234_v25 = vmul.f32 %v233_v24, %v233_v24 }
 0x1b2   :  { %235 = vadd.xlane.f32.xlu0 %v234_v25 }
 0x23b   :  { %v236_v32 = vpop.xlane.xlu0 %235 }
 0x23c   :  { %v237_v33 = vmul.f32 0.03125, %v236_v32 }
 0x23e   :  { %v238_v34 = vadd.f32 1e-05, %v237_v33 }
 0x240   :  { %828 = vrsqrt.f32 %v238_v34 }
 0x24d   :  { %v829_v35 = vpop.eup %828 }
 0x24e   :  { %v240_v36 = vmul.f32 %v829_v35, %v229_v23 }
 0x250   :  { %v241_v37 = vmax.f32 %v240_v36, 0.0 }
 0x252   :  { %v644_v39 = vpack.c.bf16 %v241_v37, %v241_v37 }
 0x254   :  { %743 = vmatmul.mubr.msk.bf16.vlgmr.msra.gmra.mxu1 %vm1084_vm2, %v644_v39 }
 0x255   :  { %782 = vmatprep.mubr.msk.bf16.mxu1 %vm970_vm0, %v969_v0  ;;  %767 = vmatpush3.bf16.msra.mxu1 %v820_v9 }
 0x256   :  { %768 = vmatprep.subr.bf16.mxu1 %v969_v0 }
 0x259   :  { %769 = vmatpush3.bf16.msra.mxu1 %v821_v10 }
 0x25a   :  { %770 = vmatprep.subr.bf16.mxu1 %v969_v0 }
 0x25d   :  { %771 = vmatpush3.bf16.msra.mxu1 %v822_v16 }
 0x25e   :  { %772 = vmatprep.subr.bf16.mxu1 %v969_v0 }
 0x261   :  { %773 = vmatpush3.bf16.msra.mxu1 %v823_v17 }
 0x262   :  { %774 = vmatprep.subr.bf16.mxu1 %v969_v0 }
 0x265   :  { %775 = vmatpush3.bf16.msra.mxu1 %v824_v18 }
 0x266   :  { %776 = vmatprep.subr.bf16.mxu1 %v969_v0 }
 0x269   :  { %777 = vmatpush3.bf16.msra.mxu1 %v825_v19 }
 0x26a   :  { %778 = vmatprep.subr.bf16.mxu1 %v969_v0 }
 0x26d   :  { %779 = vmatpush3.bf16.msra.mxu1 %v826_v21 }
 0x26e   :  { %780 = vmatprep.subr.bf16.mxu1 %v969_v0 }
 0x271   :  { %781 = vmatpush3.bf16.msra.mxu1 %v827_v20 }
 0x314   :  { %v349_v41 = vpop.f32.mrf.mxu1 }
 0x315   :  { %v350_v42 = vadd.f32 %v634_v40, %v349_v41 }
 0x316   :  { %v744_v43 = vpop.f32.mrf.mxu1 }
 0x317   :  { %355 = vadd.xlane.f32.xlu1 %v350_v42 }
 0x318   :  { %v352_v44 = vpop.f32.mrf.mxu1 }
 0x31a   :  { %v745_v45 = vpop.f32.mrf.mxu1 }
 0x3a0   :  { %v356_v48 = vpop.xlane.xlu1 %355 }
 0x3a1   :  { %v357_v49 = vmul.f32 0.03125, %v356_v48 }
 0x3a3   :  { %v358_v50 = vsub.f32 %v350_v42, %v357_v49 }
 0x3a5   :  { %v359_v51 = vsel %vm232_vm1, %v358_v50, 0.0 }
 0x3a6   :  { %v360_v52 = vmul.f32 %v359_v51, %v359_v51 }
 0x3a8   :  { %361 = vadd.xlane.f32.xlu1 %v360_v52 }
 0x431   :  { %v362_v59 = vpop.xlane.xlu1 %361 }
 0x432   :  { %v363_v60 = vmul.f32 0.03125, %v362_v59 }
 0x434   :  { %v364_v61 = vadd.f32 1e-05, %v363_v60 }
 0x436   :  { %830 = vrsqrt.f32 %v364_v61 }
 0x443   :  { %v831_v62 = vpop.eup %830 }
 0x444   :  { %v366_v63 = vmul.f32 %v831_v62, %v358_v50 }
 0x446   :  { %v367_v1 = vmax.f32 %v366_v63, 0.0 }
 0x448   :  { %v656_v2 = vpack.c.bf16 %v367_v1, %v367_v1 }
 0x44a   :  { %763 = vmatmul.mubr.msk.bf16.vlgmr.msra.gmra.mxu0 %vm1084_vm2, %v656_v2 }
 0x50a   :  { %v475_v4 = vpop.f32.mrf.mxu0 }
 0x50b   :  { %v476_v5 = vadd.f32 %v646_v3, %v475_v4 }
 0x50c   :  { %v764_v6 = vpop.f32.mrf.mxu0 }
 0x50d   :  { %481 = vadd.xlane.f32.xlu0 %v476_v5 }
 0x50e   :  { %v478_v7 = vpop.f32.mrf.mxu0 }
 0x510   :  { %v765_v8 = vpop.f32.mrf.mxu0 }
 0x596   :  { %v482_v11 = vpop.xlane.xlu0 %481 }
 0x597   :  { %v483_v12 = vmul.f32 0.03125, %v482_v11 }
 0x599   :  { %v484_v13 = vsub.f32 %v476_v5, %v483_v12 }
 0x59b   :  { %v485_v14 = vsel %vm232_vm1, %v484_v13, 0.0 }
 0x59c   :  { %v486_v15 = vmul.f32 %v485_v14, %v485_v14 }
 0x59e   :  { %487 = vadd.xlane.f32.xlu1 %v486_v15 }
 0x627   :  { %v488_v22 = vpop.xlane.xlu1 %487 }
 0x628   :  { %v489_v23 = vmul.f32 0.03125, %v488_v22 }
 0x62a   :  { %v490_v24 = vadd.f32 1e-05, %v489_v23 }
 0x62c   :  { %832 = vrsqrt.f32 %v490_v24 }
 0x639   :  { %v833_v25 = vpop.eup %832 }
 0x63a   :  { %v492_v26 = vmul.f32 %v833_v25, %v484_v13 }
 0x63c   :  { %v493_v27 = vmax.f32 %v492_v26, 0.0 }
 0x63e   :  { %v668_v28 = vpack.c.bf16 %v493_v27, %v493_v27 }
 0x640   :  { %783 = vmatmul.mubr.msk.bf16.vlgmr.msra.gmra.mxu1 %vm1084_vm2, %v668_v28 }
 0x700   :  { %v601_v30 = vpop.f32.mrf.mxu1 }
 0x701   :  { %v602_v0 = vadd.f32 %v658_v29, %v601_v30 }
 0x702   :  { %v784_v31 = vpop.f32.mrf.mxu1 }
 0x703   :  { %607 = vst [vmem:[#allocation12] sm:$0xff] %v602_v0 }
 0x704   :  { %v604_v32 = vpop.f32.mrf.mxu1 }
 0x705   :  { %945 = shalt.err (!%p942_p1)
}
 0x706   :  { %617 = dma.vmem_to_hbm [thread:$0]  %s615_s16, 128, %s1135_s9, [#allocation5]   ;;  %v785_v33 = vpop.f32.mrf.mxu1 }
 0x707   :  { %960 = dma.done.wait [#allocation5], 128  }
 0x708   :  { %961 = vsyncadd [#allocation5], 4294967168 }
 0x709   :  { %621 = vsyncpa [#allocation4], 1 }
 0x70a   :  { %622 = vsyncpa [#allocation7], 1 }
 0x70b   :  { %623 = vsyncpa [#allocation10], 1 }
 0x70c   :  { %624 = vsyncpa [#allocation5], 1 }

</bundles_post_ra>
